<compile_context>
chip_gen: v6e
topology: v6e:2x2x1
jax: 0.10.0
libtpu: 0.0.40
codegen_flags: <defaults>
</compile_context>

<pallas_src>
import functools

import jax
import jax.numpy as jnp
from jax import lax
from jax.experimental import pallas as pl
from jax.experimental.pallas import tpu as pltpu


# ----------------------------- static geometry helpers -----------------------------

def _branch_geometry(L, k):
    """Output length of Conv1d(kernel=k, stride=k, padding=k//2) on length L."""
    p = k // 2
    out_len = (L + 2 * p - k) // k + 1
    return p, out_len


def _align8(n):
    return ((n + 7) // 8) * 8


def _round128(n):
    return ((n + 127) // 128) * 128


# ----------------------------- fused MIC-layer Pallas kernel -----------------------------

def _make_mic_kernel(*, L, C, in_w, out_w, ks, kds, isos, out_lens, offs, has_proj):
    n_k = len(ks)
    eps = 1e-5

    def ln(v, g, b):
        m = jnp.mean(v, axis=-1, keepdims=True)
        c = v - m
        var = jnp.mean(c * c, axis=-1, keepdims=True)
        return c * lax.rsqrt(var + eps) * g + b

    def kernel(*refs):
        it = iter(refs)
        src_ref = next(it)
        vec_ref = next(it)
        branch_w = [(next(it), next(it), next(it)) for _ in range(n_k)]   # cw, iw, tw
        merge_ref = next(it)
        conv1_ref = next(it)
        conv2_ref = next(it)
        proj_w_ref = proj_b_ref = None
        if has_proj:
            proj_w_ref = next(it)
            proj_b_ref = next(it)
        out_ref = next(it)
        bufs = [next(it) for _ in range(n_k)]                             # per-branch scratch

        # packed parameter vectors: one DMA, sliced with static row offsets
        vecs = vec_ref[...].astype(jnp.float32)
        norm_g, norm_b = vecs[0:1, :], vecs[1:2, :]
        norm1_g, norm1_b = vecs[2:3, :], vecs[3:4, :]
        norm2_g, norm2_b = vecs[4:5, :], vecs[5:6, :]
        merge_b = vecs[6:7, :]
        conv12_b = vecs[7:8, :]          # conv1_b @ conv2_w + conv2_b (folded)

        x_full = src_ref[0]                                  # (L, in_w): one batch row
        x = (x_full[:, 0:C] if in_w > C else x_full).astype(jnp.float32)

        bouts = []
        for bi in range(n_k):
            k, kd, iso_k, out_len = ks[bi], kds[bi], isos[bi], out_lens[bi]
            a_off, b_off, c_off, d_off = offs[bi]
            cw_ref, iw_ref, tw_ref = branch_w[bi]
            buf = bufs[bi]
            r0 = 8 + 3 * bi
            conv_b = vecs[r0:r0 + 1, :]
            iso_b = vecs[r0 + 1:r0 + 2, :]
            trans_b = vecs[r0 + 2:r0 + 3, :]

            # --- series_decomp residual: x - moving_avg(x, kd), replicate pad ---
            pd = (kd - 1) // 2
            if pd > 0:
                buf[a_off:a_off + pd, :] = jnp.broadcast_to(x[0:1, :], (pd, C))
                buf[a_off + pd + L:a_off + L + kd - 1, :] = (
                    jnp.broadcast_to(x[L - 1:L, :], (pd, C)))
            buf[a_off + pd:a_off + pd + L, :] = x
            acc = buf[a_off:a_off + L, :]
            for t in range(1, kd):
                acc = acc + buf[a_off + t:a_off + t + L, :]
            res = x - acc * (1.0 / kd)

            # --- Conv1d(C, C, k, stride=k, padding=k//2) + tanh, fused matmul ---
            # zero-padded res in scratch; taps are strided row slices (no one-hot).
            p = k // 2
            rows_b = out_len * k
            if p > 0:
                buf[b_off:b_off + p, :] = jnp.zeros((p, C), jnp.float32)
            buf[b_off + p:b_off + p + L, :] = res
            if rows_b > p + L:
                buf[b_off + p + L:b_off + rows_b, :] = (
                    jnp.zeros((rows_b - p - L, C), jnp.float32))
            taps = [buf[pl.ds(b_off + j, out_len, stride=k), :] for j in range(k)]
            win = taps[0] if k == 1 else jnp.concatenate(taps, axis=-1)   # (out_len, k*C)
            x1 = jnp.tanh(jnp.dot(win, cw_ref[...],
                                  preferred_element_type=jnp.float32) + conv_b)

            # --- isometric causal Conv1d (zero prefix out_len-1) + tanh, fused ---
            zp = out_len - 1
            if zp > 0:
                buf[c_off:c_off + zp, :] = jnp.zeros((zp, C), jnp.float32)
            buf[c_off + zp:c_off + zp + out_len, :] = x1
            itaps = [buf[c_off + t:c_off + t + out_len, :] for t in range(iso_k)]
            iwin = itaps[0] if iso_k == 1 else jnp.concatenate(itaps, axis=-1)
            xi = jnp.tanh(jnp.dot(iwin, iw_ref[...],
                                  preferred_element_type=jnp.float32) + iso_b)

            xn = ln(xi + x1, norm_g, norm_b)

            # --- ConvTranspose1d(C, C, k, stride=k) + tanh, crop to L ---
            # one matmul (N = k*C lanes), then k strided row stores (scatter).
            big = jnp.dot(xn, tw_ref[...], preferred_element_type=jnp.float32)
            for j in range(k):
                buf[pl.ds(d_off + j, out_len, stride=k), :] = big[:, j * C:(j + 1) * C]
            y = jnp.tanh(buf[d_off:d_off + L, :] + trans_b)

            bouts.append(ln(y + res, norm_g, norm_b))

        # --- merge (Conv2d over the branch axis) as one fused matmul ---
        cat = bouts[0] if n_k == 1 else jnp.concatenate(bouts, axis=-1)   # (L, n_k*C)
        mg = jnp.dot(cat, merge_ref[...], preferred_element_type=jnp.float32) + merge_b

        # --- feed-forward tail: norm1 -> conv1 -> conv2 (+folded bias) -> norm2 ---
        y1 = ln(mg, norm1_g, norm1_b)
        h = jnp.dot(y1, conv1_ref[...], preferred_element_type=jnp.float32)
        y2 = jnp.dot(h, conv2_ref[...], preferred_element_type=jnp.float32) + conv12_b
        out = ln(mg + y2, norm2_g, norm2_b)

        if has_proj:                       # final Linear fused; proj_w zero-padded to 128 lanes
            out = jnp.dot(out, proj_w_ref[...],
                          preferred_element_type=jnp.float32) + proj_b_ref[...]
        elif out_w > C:                    # lane-dense intermediate layer output
            out = jnp.concatenate(
                [out, jnp.zeros((L, out_w - C), jnp.float32)], axis=-1)
        out_ref[0] = out.astype(out_ref.dtype)

    return kernel


# ----------------------------- pallas_call wrapper -----------------------------

def mic_layer_forward(src, lp, conv_kernels, decomp_kernels, iso_kernels, proj=None):
    """One fused pallas_call for a full MIC layer (optionally + final projection)."""
    B, L, in_w = src.shape
    n_k = len(conv_kernels)
    C = lp["merge_w"].shape[1]
    assert lp["merge_w"].shape == (n_k * C, C)
    assert in_w >= C

    out_lens, offs, branch_rows = [], [], []
    for bi, (k, kd, iso_k) in enumerate(zip(conv_kernels, decomp_kernels, iso_kernels)):
        _, out_len = _branch_geometry(L, k)
        assert kd % 2 == 1, "decomposition (moving-average) kernels must be odd"
        assert iso_k == out_len, "isometric kernel must equal the downsampled length"
        assert out_len * k >= L
        assert lp["branches"][bi]["cw"].shape == (k * C, C)
        assert lp["branches"][bi]["iw"].shape == (iso_k * C, C)
        assert lp["branches"][bi]["tw"].shape == (C, k * C)
        # disjoint, 8-aligned scratch regions: decomp pad / down pad / iso pad / scatter
        a_off = 0
        b_off = a_off + _align8(L + kd - 1)
        c_off = b_off + _align8(out_len * k)
        d_off = c_off + _align8(2 * out_len - 1)
        rows = d_off + _align8(out_len * k)
        out_lens.append(out_len)
        offs.append((a_off, b_off, c_off, d_off))
        branch_rows.append(rows)

    out_w = proj[0].shape[1] if proj is not None else _round128(C)

    inputs = [src]
    in_specs = [pl.BlockSpec((1, L, in_w), lambda b: (b, 0, 0))]

    def add(arr):
        inputs.append(arr)
        in_specs.append(pl.BlockSpec(arr.shape, lambda b, _n=arr.ndim: (0,) * _n))

    add(lp["vecs"])
    for br in lp["branches"]:
        add(br["cw"])
        add(br["iw"])
        add(br["tw"])
    add(lp["merge_w"])
    add(lp["conv1_w"])
    add(lp["conv2_w"])
    if proj is not None:
        add(proj[0])
        add(proj[1])

    kernel = _make_mic_kernel(
        L=L, C=C, in_w=in_w, out_w=out_w,
        ks=tuple(conv_kernels), kds=tuple(decomp_kernels),
        isos=tuple(iso_kernels), out_lens=tuple(out_lens),
        offs=tuple(offs), has_proj=proj is not None)

    return pl.pallas_call(
        kernel,
        grid=(B,),
        in_specs=in_specs,
        out_specs=pl.BlockSpec((1, L, out_w), lambda b: (b, 0, 0)),
        out_shape=jax.ShapeDtypeStruct((B, L, out_w), src.dtype),
        scratch_shapes=[pltpu.VMEM((rows, C), jnp.float32) for rows in branch_rows],
        compiler_params=pltpu.CompilerParams(
            dimension_semantics=("parallel",),      # batch rows shard across v7x's 2 TCs
            vmem_limit_bytes=32 * 1024 * 1024,      # safe on v5e / v6e / v7x
        ),
    )(*inputs)


def seasonal_prediction_forward(dec, pp, conv_kernels, decomp_kernels, iso_kernels, c_out):
    n_layers = len(pp["layers"])
    x = dec
    for li, lp in enumerate(pp["layers"]):
        proj = (pp["proj_w"], pp["proj_b"]) if li == n_layers - 1 else None
        x = mic_layer_forward(x, lp, conv_kernels, decomp_kernels, iso_kernels, proj)
    return x[:, :, :c_out]        # drop the lane padding outside the pallas_call


# ----------------------------- parameters (PyTorch layout) + preprocessing -----------------------------

def init_params(key, C, c_out, conv_kernels, iso_kernels, d_layers):
    keys = iter(jax.random.split(key, 256))

    def nrm(shape, scale=0.05):
        return scale * jax.random.normal(next(keys), shape, jnp.float32)

    n_k = len(conv_kernels)
    mic_layers = []
    for _ in range(d_layers):
        branches = []
        for k, iso_k in zip(conv_kernels, iso_kernels):
            branches.append(dict(
                conv_w=nrm((C, C, k)), conv_b=nrm((C,)),          # Conv1d
                iso_w=nrm((C, C, iso_k)), iso_b=nrm((C,)),        # isometric Conv1d
                trans_w=nrm((C, C, k)), trans_b=nrm((C,)),        # ConvTranspose1d
            ))
        mic_layers.append(dict(
            branches=branches,
            norm_g=jnp.ones((C,), jnp.float32), norm_b=jnp.zeros((C,), jnp.float32),
            merge_w=nrm((C, C, n_k, 1)), merge_b=nrm((C,)),
            conv1_w=nrm((4 * C, C, 1)), conv1_b=nrm((4 * C,)),
            conv2_w=nrm((C, 4 * C, 1)), conv2_b=nrm((C,)),
            norm1_g=jnp.ones((C,), jnp.float32), norm1_b=jnp.zeros((C,), jnp.float32),
            norm2_g=jnp.ones((C,), jnp.float32), norm2_b=jnp.zeros((C,), jnp.float32),
        ))
    return dict(mic=mic_layers, proj_w=nrm((c_out, C)), proj_b=nrm((c_out,)))


def preprocess_params(params, L, conv_kernels, iso_kernels):
    """One-time hoisting: tap-weight concatenation (fused-K matmuls), packed bias/LN
    vectors (single DMA), folded conv1 bias, lane-padded projection weights."""
    C = params["mic"][0]["norm_g"].shape[0]
    n_k = len(conv_kernels)
    c_out = params["proj_w"].shape[0]

    layers = []
    for lp in params["mic"]:
        conv2_w2d = lp["conv2_w"][:, :, 0].T                              # (4C, C)
        conv12_b = lp["conv1_b"] @ conv2_w2d + lp["conv2_b"]              # folded bias
        vec_rows = [lp["norm_g"], lp["norm_b"], lp["norm1_g"], lp["norm1_b"],
                    lp["norm2_g"], lp["norm2_b"], lp["merge_b"], conv12_b]
        branches = []
        for bi, (k, iso_k) in enumerate(zip(conv_kernels, iso_kernels)):
            bp = lp["branches"][bi]
            branches.append(dict(
                cw=jnp.transpose(bp["conv_w"], (2, 1, 0)).reshape(k * C, C),
                iw=jnp.transpose(bp["iso_w"], (2, 1, 0)).reshape(iso_k * C, C),
                tw=jnp.transpose(bp["trans_w"], (0, 2, 1)).reshape(C, k * C),
            ))
            vec_rows.extend([bp["conv_b"], bp["iso_b"], bp["trans_b"]])
        pad = (-len(vec_rows)) % 8
        vecs = jnp.stack(vec_rows + [jnp.zeros((C,), jnp.float32)] * pad, axis=0)
        layers.append(dict(
            vecs=vecs,
            branches=branches,
            merge_w=jnp.transpose(lp["merge_w"][:, :, :, 0], (2, 1, 0)).reshape(n_k * C, C),
            conv1_w=lp["conv1_w"][:, :, 0].T,                             # (C, 4C)
            conv2_w=conv2_w2d,                                            # (4C, C)
        ))

    out_w = _round128(max(c_out, 1))
    proj_w_pad = jnp.zeros((C, out_w), jnp.float32).at[:, :c_out].set(params["proj_w"].T)
    proj_b_pad = jnp.zeros((1, out_w), jnp.float32).at[:, :c_out].set(params["proj_b"][None, :])
    return dict(layers=layers, proj_w=proj_w_pad, proj_b=proj_b_pad)


# ----------------------------- pure-JAX reference (numerics cross-check) -----------------------------

def _mm(a, w):
    return jnp.einsum("blc,cd->bld", a, w, precision="highest")


def reference_forward(dec, params, conv_kernels, decomp_kernels, iso_kernels):
    def ln(v, g, b, eps=1e-5):
        m = v.mean(-1, keepdims=True)
        var = ((v - m) ** 2).mean(-1, keepdims=True)
        return (v - m) / jnp.sqrt(var + eps) * g + b

    x = dec
    for lp in params["mic"]:
        B, L, C = x.shape
        outs = []
        for bi, (k, kd, iso_k) in enumerate(zip(conv_kernels, decomp_kernels, iso_kernels)):
            bp = lp["branches"][bi]
            pd = (kd - 1) // 2
            xp = jnp.concatenate([jnp.repeat(x[:, :1], pd, axis=1), x,
                                  jnp.repeat(x[:, -1:], pd, axis=1)], axis=1)
            ma = jnp.mean(jnp.stack([xp[:, t:t + L] for t in range(kd)], 0), axis=0)
            res = x - ma

            p, out_len = _branch_geometry(L, k)
            xz = jnp.pad(res, ((0, 0), (p, p), (0, 0)))
            wc = jnp.transpose(bp["conv_w"], (2, 1, 0))
            x1 = sum(_mm(xz[:, j::k][:, :out_len], wc[j]) for j in range(k))
            x1 = jnp.tanh(x1 + bp["conv_b"])

            xc = jnp.concatenate([jnp.zeros((B, out_len - 1, C), x.dtype), x1], axis=1)
            wi = jnp.transpose(bp["iso_w"], (2, 1, 0))
            xi = sum(_mm(xc[:, t:t + out_len], wi[t]) for t in range(iso_k))
            xi = jnp.tanh(xi + bp["iso_b"])

            xn = ln(xi + x1, lp["norm_g"], lp["norm_b"])

            wt = jnp.transpose(bp["trans_w"], (2, 0, 1))
            y = jnp.zeros((B, out_len * k, C), x.dtype)
            for j in range(k):
                y = y.at[:, j::k].set(_mm(xn, wt[j]))
            y = jnp.tanh(y + bp["trans_b"])[:, :L]

            outs.append(ln(y + res, lp["norm_g"], lp["norm_b"]))

        wm = jnp.transpose(lp["merge_w"][:, :, :, 0], (2, 1, 0))
        mg = sum(_mm(outs[i], wm[i]) for i in range(len(outs))) + lp["merge_b"]
        y1 = ln(mg, lp["norm1_g"], lp["norm1_b"])
        h = _mm(y1, lp["conv1_w"][:, :, 0].T) + lp["conv1_b"]
        y2 = _mm(h, lp["conv2_w"][:, :, 0].T) + lp["conv2_b"]
        x = ln(mg + y2, lp["norm2_g"], lp["norm2_b"])
    return _mm(x, params["proj_w"].T) + params["proj_b"]


# ----------------------------- demo -----------------------------

if __name__ == "__main__":
    # TODO(synk): Dropout(p=0.05) has no effect in eval mode; omitted (identity).
    B, L, C, c_out = 2, 24, 32, 1            # small: batch=2, seq=24, embedding=32
    conv_kernels = [2, 4]
    decomp_kernels = [3, 5]                   # odd moving-average kernels
    iso_kernels = [_branch_geometry(L, k)[1] for k in conv_kernels]   # [13, 7]
    d_layers = 1

    key = jax.random.PRNGKey(0)
    k_inp, k_par = jax.random.split(key)
    dec = jax.random.normal(k_inp, (B, L, C), jnp.float32)
    params = init_params(k_par, C, c_out, conv_kernels, iso_kernels, d_layers)
    pp = preprocess_params(params, L, conv_kernels, iso_kernels)   # once, outside fwd path

    fwd = jax.jit(functools.partial(
        seasonal_prediction_forward,
        conv_kernels=tuple(conv_kernels),
        decomp_kernels=tuple(decomp_kernels),
        iso_kernels=tuple(iso_kernels),
        c_out=c_out))

    out = jax.block_until_ready(fwd(dec, pp))

    assert out.shape == (B, L, c_out)
    assert bool(jnp.all(jnp.isfinite(out)))

    # numerics cross-check against a plain-JAX mirror of the PyTorch module
    ref = reference_forward(dec, params, conv_kernels, decomp_kernels, iso_kernels)
    max_err = float(jnp.max(jnp.abs(out - ref)))
    assert max_err < 1e-3, f"kernel/reference mismatch: max abs err = {max_err}"

    print("KERNEL_OK")
</pallas_src>

<mosaic_0001>
module attributes {stable_mosaic.version = 11 : i64} {
  func.func @kernel(%arg0: i32, %arg1: memref<1x24x32xf32, #tpu.memory_space<vmem>>, %arg2: memref<16x32xf32, #tpu.memory_space<vmem>>, %arg3: memref<64x32xf32, #tpu.memory_space<vmem>>, %arg4: memref<416x32xf32, #tpu.memory_space<vmem>>, %arg5: memref<32x64xf32, #tpu.memory_space<vmem>>, %arg6: memref<128x32xf32, #tpu.memory_space<vmem>>, %arg7: memref<224x32xf32, #tpu.memory_space<vmem>>, %arg8: memref<32x128xf32, #tpu.memory_space<vmem>>, %arg9: memref<64x32xf32, #tpu.memory_space<vmem>>, %arg10: memref<32x128xf32, #tpu.memory_space<vmem>>, %arg11: memref<128x32xf32, #tpu.memory_space<vmem>>, %arg12: memref<32x128xf32, #tpu.memory_space<vmem>>, %arg13: memref<1x128xf32, #tpu.memory_space<vmem>>, %arg14: memref<1x24x128xf32, #tpu.memory_space<vmem>>, %arg15: memref<128x32xf32, #tpu.memory_space<vmem>>, %arg16: memref<112x32xf32, #tpu.memory_space<vmem>>) attributes {dimension_semantics = [#tpu.dimension_semantics<parallel>], iteration_bounds = array<i64: 2>, scalar_prefetch = 0 : i64, scratch_operands = 2 : i64, tpu.core_type = #tpu.core_type<tc>, window_params = [{transform_indices = @transform_0, window_bounds = array<i64: 1, 24, 32>}, {pipeline_mode = #tpu.pipeline_mode<synchronous>, transform_indices = @transform_1, window_bounds = array<i64: 16, 32>}, {pipeline_mode = #tpu.pipeline_mode<synchronous>, transform_indices = @transform_2, window_bounds = array<i64: 64, 32>}, {pipeline_mode = #tpu.pipeline_mode<synchronous>, transform_indices = @transform_3, window_bounds = array<i64: 416, 32>}, {pipeline_mode = #tpu.pipeline_mode<synchronous>, transform_indices = @transform_4, window_bounds = array<i64: 32, 64>}, {pipeline_mode = #tpu.pipeline_mode<synchronous>, transform_indices = @transform_5, window_bounds = array<i64: 128, 32>}, {pipeline_mode = #tpu.pipeline_mode<synchronous>, transform_indices = @transform_6, window_bounds = array<i64: 224, 32>}, {pipeline_mode = #tpu.pipeline_mode<synchronous>, transform_indices = @transform_7, window_bounds = array<i64: 32, 128>}, {pipeline_mode = #tpu.pipeline_mode<synchronous>, transform_indices = @transform_8, window_bounds = array<i64: 64, 32>}, {pipeline_mode = #tpu.pipeline_mode<synchronous>, transform_indices = @transform_9, window_bounds = array<i64: 32, 128>}, {pipeline_mode = #tpu.pipeline_mode<synchronous>, transform_indices = @transform_10, window_bounds = array<i64: 128, 32>}, {pipeline_mode = #tpu.pipeline_mode<synchronous>, transform_indices = @transform_11, window_bounds = array<i64: 32, 128>}, {pipeline_mode = #tpu.pipeline_mode<synchronous>, transform_indices = @transform_12, window_bounds = array<i64: 1, 128>}, {transform_indices = @transform_13, window_bounds = array<i64: 1, 24, 128>}]} {
    %c0 = arith.constant 0 : index
    %c0_0 = arith.constant 0 : index
    %0 = vector.load %arg2[%c0, %c0_0] : memref<16x32xf32, #tpu.memory_space<vmem>>, vector<16x32xf32>
    %1 = vector.extract_strided_slice %0 {offsets = [0, 0], sizes = [1, 32], strides = [1, 1]} : vector<16x32xf32> to vector<1x32xf32>
    %2 = vector.extract_strided_slice %0 {offsets = [1, 0], sizes = [1, 32], strides = [1, 1]} : vector<16x32xf32> to vector<1x32xf32>
    %3 = vector.extract_strided_slice %0 {offsets = [2, 0], sizes = [1, 32], strides = [1, 1]} : vector<16x32xf32> to vector<1x32xf32>
    %4 = vector.extract_strided_slice %0 {offsets = [3, 0], sizes = [1, 32], strides = [1, 1]} : vector<16x32xf32> to vector<1x32xf32>
    %5 = vector.extract_strided_slice %0 {offsets = [4, 0], sizes = [1, 32], strides = [1, 1]} : vector<16x32xf32> to vector<1x32xf32>
    %6 = vector.extract_strided_slice %0 {offsets = [5, 0], sizes = [1, 32], strides = [1, 1]} : vector<16x32xf32> to vector<1x32xf32>
    %7 = vector.extract_strided_slice %0 {offsets = [6, 0], sizes = [1, 32], strides = [1, 1]} : vector<16x32xf32> to vector<1x32xf32>
    %8 = vector.extract_strided_slice %0 {offsets = [7, 0], sizes = [1, 32], strides = [1, 1]} : vector<16x32xf32> to vector<1x32xf32>
    %c0_1 = arith.constant 0 : index
    %c0_2 = arith.constant 0 : index
    %c0_3 = arith.constant 0 : index
    %9 = vector.load %arg1[%c0_1, %c0_2, %c0_3] : memref<1x24x32xf32, #tpu.memory_space<vmem>>, vector<1x24x32xf32>
    %10 = vector.shape_cast %9 : vector<1x24x32xf32> to vector<24x32xf32>
    %11 = vector.extract_strided_slice %0 {offsets = [8, 0], sizes = [1, 32], strides = [1, 1]} : vector<16x32xf32> to vector<1x32xf32>
    %12 = vector.extract_strided_slice %0 {offsets = [9, 0], sizes = [1, 32], strides = [1, 1]} : vector<16x32xf32> to vector<1x32xf32>
    %13 = vector.extract_strided_slice %0 {offsets = [10, 0], sizes = [1, 32], strides = [1, 1]} : vector<16x32xf32> to vector<1x32xf32>
    %14 = vector.extract_strided_slice %10 {offsets = [0, 0], sizes = [1, 32], strides = [1, 1]} : vector<24x32xf32> to vector<1x32xf32>
    %c0_4 = arith.constant 0 : index
    %c0_5 = arith.constant 0 : index
    %15 = vector.load %arg15[%c0_4, %c0_5] : memref<128x32xf32, #tpu.memory_space<vmem>>, vector<1x32xf32>
    tpu.vector_store %arg15[%c0_4, %c0_5], %14 {strides = array<i32>} : memref<128x32xf32, #tpu.memory_space<vmem>>, vector<1x32xf32>,
    %16 = vector.extract_strided_slice %10 {offsets = [23, 0], sizes = [1, 32], strides = [1, 1]} : vector<24x32xf32> to vector<1x32xf32>
    %c25 = arith.constant 25 : index
    %c0_6 = arith.constant 0 : index
    %17 = vector.load %arg15[%c25, %c0_6] : memref<128x32xf32, #tpu.memory_space<vmem>>, vector<1x32xf32>
    tpu.vector_store %arg15[%c25, %c0_6], %16 {strides = array<i32>} : memref<128x32xf32, #tpu.memory_space<vmem>>, vector<1x32xf32>,
    %c1 = arith.constant 1 : index
    %c0_7 = arith.constant 0 : index
    %18 = vector.load %arg15[%c1, %c0_7] : memref<128x32xf32, #tpu.memory_space<vmem>>, vector<24x32xf32>
    tpu.vector_store %arg15[%c1, %c0_7], %10 {strides = array<i32>} : memref<128x32xf32, #tpu.memory_space<vmem>>, vector<24x32xf32>,
    %c0_8 = arith.constant 0 : index
    %c0_9 = arith.constant 0 : index
    %19 = vector.load %arg15[%c0_8, %c0_9] : memref<128x32xf32, #tpu.memory_space<vmem>>, vector<24x32xf32>
    %c1_10 = arith.constant 1 : index
    %c0_11 = arith.constant 0 : index
    %20 = vector.load %arg15[%c1_10, %c0_11] : memref<128x32xf32, #tpu.memory_space<vmem>>, vector<24x32xf32>
    %21 = arith.addf %19, %20 : vector<24x32xf32>
    %c2 = arith.constant 2 : index
    %c0_12 = arith.constant 0 : index
    %22 = vector.load %arg15[%c2, %c0_12] : memref<128x32xf32, #tpu.memory_space<vmem>>, vector<24x32xf32>
    %23 = arith.addf %21, %22 : vector<24x32xf32>
    %cst = arith.constant 0.333333343 : f32
    %24 = vector.broadcast %cst : f32 to vector<24x32xf32>
    %25 = arith.mulf %23, %24 : vector<24x32xf32>
    %26 = arith.subf %10, %25 : vector<24x32xf32>
    %cst_13 = arith.constant 0.000000e+00 : f32
    %27 = vector.broadcast %cst_13 : f32 to vector<1x32xf32>
    %c32 = arith.constant 32 : index
    %c0_14 = arith.constant 0 : index
    %28 = vector.load %arg15[%c32, %c0_14] : memref<128x32xf32, #tpu.memory_space<vmem>>, vector<1x32xf32>
    tpu.vector_store %arg15[%c32, %c0_14], %27 {strides = array<i32>} : memref<128x32xf32, #tpu.memory_space<vmem>>, vector<1x32xf32>,
    %c33 = arith.constant 33 : index
    %c0_15 = arith.constant 0 : index
    %29 = vector.load %arg15[%c33, %c0_15] : memref<128x32xf32, #tpu.memory_space<vmem>>, vector<24x32xf32>
    tpu.vector_store %arg15[%c33, %c0_15], %26 {strides = array<i32>} : memref<128x32xf32, #tpu.memory_space<vmem>>, vector<24x32xf32>,
    %cst_16 = arith.constant 0.000000e+00 : f32
    %30 = vector.broadcast %cst_16 : f32 to vector<1x32xf32>
    %c57 = arith.constant 57 : index
    %c0_17 = arith.constant 0 : index
    %31 = vector.load %arg15[%c57, %c0_17] : memref<128x32xf32, #tpu.memory_space<vmem>>, vector<1x32xf32>
    tpu.vector_store %arg15[%c57, %c0_17], %30 {strides = array<i32>} : memref<128x32xf32, #tpu.memory_space<vmem>>, vector<1x32xf32>,
    %c32_18 = arith.constant 32 : index
    %c0_19 = arith.constant 0 : index
    %32 = tpu.strided_load %arg15[%c32_18, %c0_19] {strides = array<i32: 2, 1>} : memref<128x32xf32, #tpu.memory_space<vmem>>, vector<13x32xf32>
    %c33_20 = arith.constant 33 : index
    %c0_21 = arith.constant 0 : index
    %33 = tpu.strided_load %arg15[%c33_20, %c0_21] {strides = array<i32: 2, 1>} : memref<128x32xf32, #tpu.memory_space<vmem>>, vector<13x32xf32>
    %34 = tpu.concatenate %32, %33 in 1 : vector<13x32xf32>, vector<13x32xf32> -> vector<13x64xf32>
    %c0_22 = arith.constant 0 : index
    %c0_23 = arith.constant 0 : index
    %35 = vector.load %arg3[%c0_22, %c0_23] : memref<64x32xf32, #tpu.memory_space<vmem>>, vector<64x32xf32>
    %cst_24 = arith.constant dense<0.000000e+00> : vector<13x32xf32>
    %36 = tpu.matmul %34, %35, %cst_24 {dimension_numbers = #tpu.dot_dimension_numbers<[1], [0], [0], [1], [0, 0, 1, 1], [], []>} : vector<13x64xf32>, vector<64x32xf32>, vector<13x32xf32> -> vector<13x32xf32>
    %37 = vector.broadcast %11 : vector<1x32xf32> to vector<13x32xf32>
    %38 = arith.addf %36, %37 : vector<13x32xf32>
    %39 = math.tanh %38 : vector<13x32xf32>
    %cst_25 = arith.constant 0.000000e+00 : f32
    %40 = vector.broadcast %cst_25 : f32 to vector<12x32xf32>
    %c64 = arith.constant 64 : index
    %c0_26 = arith.constant 0 : index
    %41 = vector.load %arg15[%c64, %c0_26] : memref<128x32xf32, #tpu.memory_space<vmem>>, vector<12x32xf32>
    tpu.vector_store %arg15[%c64, %c0_26], %40 {strides = array<i32>} : memref<128x32xf32, #tpu.memory_space<vmem>>, vector<12x32xf32>,
    %c76 = arith.constant 76 : index
    %c0_27 = arith.constant 0 : index
    %42 = vector.load %arg15[%c76, %c0_27] : memref<128x32xf32, #tpu.memory_space<vmem>>, vector<13x32xf32>
    tpu.vector_store %arg15[%c76, %c0_27], %39 {strides = array<i32>} : memref<128x32xf32, #tpu.memory_space<vmem>>, vector<13x32xf32>,
    %c64_28 = arith.constant 64 : index
    %c0_29 = arith.constant 0 : index
    %43 = vector.load %arg15[%c64_28, %c0_29] : memref<128x32xf32, #tpu.memory_space<vmem>>, vector<13x32xf32>
    %c65 = arith.constant 65 : index
    %c0_30 = arith.constant 0 : index
    %44 = vector.load %arg15[%c65, %c0_30] : memref<128x32xf32, #tpu.memory_space<vmem>>, vector<13x32xf32>
    %c66 = arith.constant 66 : index
    %c0_31 = arith.constant 0 : index
    %45 = vector.load %arg15[%c66, %c0_31] : memref<128x32xf32, #tpu.memory_space<vmem>>, vector<13x32xf32>
    %c67 = arith.constant 67 : index
    %c0_32 = arith.constant 0 : index
    %46 = vector.load %arg15[%c67, %c0_32] : memref<128x32xf32, #tpu.memory_space<vmem>>, vector<13x32xf32>
    %c68 = arith.constant 68 : index
    %c0_33 = arith.constant 0 : index
    %47 = vector.load %arg15[%c68, %c0_33] : memref<128x32xf32, #tpu.memory_space<vmem>>, vector<13x32xf32>
    %c69 = arith.constant 69 : index
    %c0_34 = arith.constant 0 : index
    %48 = vector.load %arg15[%c69, %c0_34] : memref<128x32xf32, #tpu.memory_space<vmem>>, vector<13x32xf32>
    %c70 = arith.constant 70 : index
    %c0_35 = arith.constant 0 : index
    %49 = vector.load %arg15[%c70, %c0_35] : memref<128x32xf32, #tpu.memory_space<vmem>>, vector<13x32xf32>
    %c71 = arith.constant 71 : index
    %c0_36 = arith.constant 0 : index
    %50 = vector.load %arg15[%c71, %c0_36] : memref<128x32xf32, #tpu.memory_space<vmem>>, vector<13x32xf32>
    %c72 = arith.constant 72 : index
    %c0_37 = arith.constant 0 : index
    %51 = vector.load %arg15[%c72, %c0_37] : memref<128x32xf32, #tpu.memory_space<vmem>>, vector<13x32xf32>
    %c73 = arith.constant 73 : index
    %c0_38 = arith.constant 0 : index
    %52 = vector.load %arg15[%c73, %c0_38] : memref<128x32xf32, #tpu.memory_space<vmem>>, vector<13x32xf32>
    %c74 = arith.constant 74 : index
    %c0_39 = arith.constant 0 : index
    %53 = vector.load %arg15[%c74, %c0_39] : memref<128x32xf32, #tpu.memory_space<vmem>>, vector<13x32xf32>
    %c75 = arith.constant 75 : index
    %c0_40 = arith.constant 0 : index
    %54 = vector.load %arg15[%c75, %c0_40] : memref<128x32xf32, #tpu.memory_space<vmem>>, vector<13x32xf32>
    %c76_41 = arith.constant 76 : index
    %c0_42 = arith.constant 0 : index
    %55 = vector.load %arg15[%c76_41, %c0_42] : memref<128x32xf32, #tpu.memory_space<vmem>>, vector<13x32xf32>
    %56 = tpu.concatenate %43, %44, %45, %46, %47, %48, %49, %50, %51, %52, %53, %54, %55 in 1 : vector<13x32xf32>, vector<13x32xf32>, vector<13x32xf32>, vector<13x32xf32>, vector<13x32xf32>, vector<13x32xf32>, vector<13x32xf32>, vector<13x32xf32>, vector<13x32xf32>, vector<13x32xf32>, vector<13x32xf32>, vector<13x32xf32>, vector<13x32xf32> -> vector<13x416xf32>
    %c0_43 = arith.constant 0 : index
    %c0_44 = arith.constant 0 : index
    %57 = vector.load %arg4[%c0_43, %c0_44] : memref<416x32xf32, #tpu.memory_space<vmem>>, vector<416x32xf32>
    %cst_45 = arith.constant dense<0.000000e+00> : vector<13x32xf32>
    %58 = tpu.matmul %56, %57, %cst_45 {dimension_numbers = #tpu.dot_dimension_numbers<[1], [0], [0], [1], [0, 0, 1, 1], [], []>} : vector<13x416xf32>, vector<416x32xf32>, vector<13x32xf32> -> vector<13x32xf32>
    %59 = vector.broadcast %12 : vector<1x32xf32> to vector<13x32xf32>
    %60 = arith.addf %58, %59 : vector<13x32xf32>
    %61 = math.tanh %60 : vector<13x32xf32>
    %62 = arith.addf %61, %39 : vector<13x32xf32>
    %cst_46 = arith.constant dense<0.000000e+00> : vector<13xf32>
    %63 = vector.multi_reduction <add>, %62, %cst_46 [1] : vector<13x32xf32> to vector<13xf32>
    %64 = vector.shape_cast %63 : vector<13xf32> to vector<13x1xf32>
    %cst_47 = arith.constant 3.200000e+01 : f32
    %65 = vector.broadcast %cst_47 : f32 to vector<13x1xf32>
    %66 = arith.divf %64, %65 : vector<13x1xf32>
    %67 = vector.broadcast %66 : vector<13x1xf32> to vector<13x32xf32>
    %68 = arith.subf %62, %67 : vector<13x32xf32>
    %69 = arith.mulf %68, %68 : vector<13x32xf32>
    %cst_48 = arith.constant dense<0.000000e+00> : vector<13xf32>
    %70 = vector.multi_reduction <add>, %69, %cst_48 [1] : vector<13x32xf32> to vector<13xf32>
    %71 = vector.shape_cast %70 : vector<13xf32> to vector<13x1xf32>
    %cst_49 = arith.constant 3.200000e+01 : f32
    %72 = vector.broadcast %cst_49 : f32 to vector<13x1xf32>
    %73 = arith.divf %71, %72 : vector<13x1xf32>
    %cst_50 = arith.constant 9.99999974E-6 : f32
    %74 = vector.broadcast %cst_50 : f32 to vector<13x1xf32>
    %75 = arith.addf %73, %74 : vector<13x1xf32>
    %76 = math.rsqrt %75 : vector<13x1xf32>
    %77 = vector.broadcast %76 : vector<13x1xf32> to vector<13x32xf32>
    %78 = arith.mulf %68, %77 : vector<13x32xf32>
    %79 = vector.broadcast %1 : vector<1x32xf32> to vector<13x32xf32>
    %80 = arith.mulf %78, %79 : vector<13x32xf32>
    %81 = vector.broadcast %2 : vector<1x32xf32> to vector<13x32xf32>
    %82 = arith.addf %80, %81 : vector<13x32xf32>
    %c0_51 = arith.constant 0 : index
    %c0_52 = arith.constant 0 : index
    %83 = vector.load %arg5[%c0_51, %c0_52] : memref<32x64xf32, #tpu.memory_space<vmem>>, vector<32x64xf32>
    %cst_53 = arith.constant dense<0.000000e+00> : vector<13x64xf32>
    %84 = tpu.matmul %82, %83, %cst_53 {dimension_numbers = #tpu.dot_dimension_numbers<[1], [0], [0], [1], [0, 0, 1, 1], [], []>} : vector<13x32xf32>, vector<32x64xf32>, vector<13x64xf32> -> vector<13x64xf32>
    %85 = vector.extract_strided_slice %84 {offsets = [0, 0], sizes = [13, 32], strides = [1, 1]} : vector<13x64xf32> to vector<13x32xf32>
    %c96 = arith.constant 96 : index
    %c0_54 = arith.constant 0 : index
    %86 = tpu.strided_load %arg15[%c96, %c0_54] {strides = array<i32: 2, 1>} : memref<128x32xf32, #tpu.memory_space<vmem>>, vector<13x32xf32>
    tpu.strided_store %arg15[%c96, %c0_54], %85 {strides = array<i32: 2, 1>} : memref<128x32xf32, #tpu.memory_space<vmem>>, vector<13x32xf32>
    %87 = vector.extract_strided_slice %84 {offsets = [0, 32], sizes = [13, 32], strides = [1, 1]} : vector<13x64xf32> to vector<13x32xf32>
    %c97 = arith.constant 97 : index
    %c0_55 = arith.constant 0 : index
    %88 = tpu.strided_load %arg15[%c97, %c0_55] {strides = array<i32: 2, 1>} : memref<128x32xf32, #tpu.memory_space<vmem>>, vector<13x32xf32>
    tpu.strided_store %arg15[%c97, %c0_55], %87 {strides = array<i32: 2, 1>} : memref<128x32xf32, #tpu.memory_space<vmem>>, vector<13x32xf32>
    %c96_56 = arith.constant 96 : index
    %c0_57 = arith.constant 0 : index
    %89 = vector.load %arg15[%c96_56, %c0_57] : memref<128x32xf32, #tpu.memory_space<vmem>>, vector<24x32xf32>
    %90 = vector.broadcast %13 : vector<1x32xf32> to vector<24x32xf32>
    %91 = arith.addf %89, %90 : vector<24x32xf32>
    %92 = math.tanh %91 : vector<24x32xf32>
    %93 = arith.addf %92, %26 : vector<24x32xf32>
    %cst_58 = arith.constant dense<0.000000e+00> : vector<24xf32>
    %94 = vector.multi_reduction <add>, %93, %cst_58 [1] : vector<24x32xf32> to vector<24xf32>
    %95 = vector.shape_cast %94 : vector<24xf32> to vector<24x1xf32>
    %cst_59 = arith.constant 3.200000e+01 : f32
    %96 = vector.broadcast %cst_59 : f32 to vector<24x1xf32>
    %97 = arith.divf %95, %96 : vector<24x1xf32>
    %98 = vector.broadcast %97 : vector<24x1xf32> to vector<24x32xf32>
    %99 = arith.subf %93, %98 : vector<24x32xf32>
    %100 = arith.mulf %99, %99 : vector<24x32xf32>
    %cst_60 = arith.constant dense<0.000000e+00> : vector<24xf32>
    %101 = vector.multi_reduction <add>, %100, %cst_60 [1] : vector<24x32xf32> to vector<24xf32>
    %102 = vector.shape_cast %101 : vector<24xf32> to vector<24x1xf32>
    %cst_61 = arith.constant 3.200000e+01 : f32
    %103 = vector.broadcast %cst_61 : f32 to vector<24x1xf32>
    %104 = arith.divf %102, %103 : vector<24x1xf32>
    %cst_62 = arith.constant 9.99999974E-6 : f32
    %105 = vector.broadcast %cst_62 : f32 to vector<24x1xf32>
    %106 = arith.addf %104, %105 : vector<24x1xf32>
    %107 = math.rsqrt %106 : vector<24x1xf32>
    %108 = vector.broadcast %107 : vector<24x1xf32> to vector<24x32xf32>
    %109 = arith.mulf %99, %108 : vector<24x32xf32>
    %110 = vector.broadcast %1 : vector<1x32xf32> to vector<24x32xf32>
    %111 = arith.mulf %109, %110 : vector<24x32xf32>
    %112 = vector.broadcast %2 : vector<1x32xf32> to vector<24x32xf32>
    %113 = arith.addf %111, %112 : vector<24x32xf32>
    %114 = vector.extract_strided_slice %0 {offsets = [11, 0], sizes = [1, 32], strides = [1, 1]} : vector<16x32xf32> to vector<1x32xf32>
    %115 = vector.extract_strided_slice %0 {offsets = [12, 0], sizes = [1, 32], strides = [1, 1]} : vector<16x32xf32> to vector<1x32xf32>
    %116 = vector.extract_strided_slice %0 {offsets = [13, 0], sizes = [1, 32], strides = [1, 1]} : vector<16x32xf32> to vector<1x32xf32>
    %117 = vector.extract_strided_slice %10 {offsets = [0, 0], sizes = [1, 32], strides = [1, 1]} : vector<24x32xf32> to vector<1x32xf32>
    %118 = vector.shape_cast %117 : vector<1x32xf32> to vector<1x32xf32>
    %119 = vector.broadcast %118 : vector<1x32xf32> to vector<2x32xf32>
    %c0_63 = arith.constant 0 : index
    %c0_64 = arith.constant 0 : index
    %120 = vector.load %arg16[%c0_63, %c0_64] : memref<112x32xf32, #tpu.memory_space<vmem>>, vector<2x32xf32>
    tpu.vector_store %arg16[%c0_63, %c0_64], %119 {strides = array<i32>} : memref<112x32xf32, #tpu.memory_space<vmem>>, vector<2x32xf32>,
    %121 = vector.extract_strided_slice %10 {offsets = [23, 0], sizes = [1, 32], strides = [1, 1]} : vector<24x32xf32> to vector<1x32xf32>
    %122 = vector.shape_cast %121 : vector<1x32xf32> to vector<1x32xf32>
    %123 = vector.broadcast %122 : vector<1x32xf32> to vector<2x32xf32>
    %c26 = arith.constant 26 : index
    %c0_65 = arith.constant 0 : index
    %124 = vector.load %arg16[%c26, %c0_65] : memref<112x32xf32, #tpu.memory_space<vmem>>, vector<2x32xf32>
    tpu.vector_store %arg16[%c26, %c0_65], %123 {strides = array<i32>} : memref<112x32xf32, #tpu.memory_space<vmem>>, vector<2x32xf32>,
    %c2_66 = arith.constant 2 : index
    %c0_67 = arith.constant 0 : index
    %125 = vector.load %arg16[%c2_66, %c0_67] : memref<112x32xf32, #tpu.memory_space<vmem>>, vector<24x32xf32>
    tpu.vector_store %arg16[%c2_66, %c0_67], %10 {strides = array<i32>} : memref<112x32xf32, #tpu.memory_space<vmem>>, vector<24x32xf32>,
    %c0_68 = arith.constant 0 : index
    %c0_69 = arith.constant 0 : index
    %126 = vector.load %arg16[%c0_68, %c0_69] : memref<112x32xf32, #tpu.memory_space<vmem>>, vector<24x32xf32>
    %c1_70 = arith.constant 1 : index
    %c0_71 = arith.constant 0 : index
    %127 = vector.load %arg16[%c1_70, %c0_71] : memref<112x32xf32, #tpu.memory_space<vmem>>, vector<24x32xf32>
    %128 = arith.addf %126, %127 : vector<24x32xf32>
    %c2_72 = arith.constant 2 : index
    %c0_73 = arith.constant 0 : index
    %129 = vector.load %arg16[%c2_72, %c0_73] : memref<112x32xf32, #tpu.memory_space<vmem>>, vector<24x32xf32>
    %130 = arith.addf %128, %129 : vector<24x32xf32>
    %c3 = arith.constant 3 : index
    %c0_74 = arith.constant 0 : index
    %131 = vector.load %arg16[%c3, %c0_74] : memref<112x32xf32, #tpu.memory_space<vmem>>, vector<24x32xf32>
    %132 = arith.addf %130, %131 : vector<24x32xf32>
    %c4 = arith.constant 4 : index
    %c0_75 = arith.constant 0 : index
    %133 = vector.load %arg16[%c4, %c0_75] : memref<112x32xf32, #tpu.memory_space<vmem>>, vector<24x32xf32>
    %134 = arith.addf %132, %133 : vector<24x32xf32>
    %cst_76 = arith.constant 2.000000e-01 : f32
    %135 = vector.broadcast %cst_76 : f32 to vector<24x32xf32>
    %136 = arith.mulf %134, %135 : vector<24x32xf32>
    %137 = arith.subf %10, %136 : vector<24x32xf32>
    %cst_77 = arith.constant 0.000000e+00 : f32
    %138 = vector.broadcast %cst_77 : f32 to vector<2x32xf32>
    %c32_78 = arith.constant 32 : index
    %c0_79 = arith.constant 0 : index
    %139 = vector.load %arg16[%c32_78, %c0_79] : memref<112x32xf32, #tpu.memory_space<vmem>>, vector<2x32xf32>
    tpu.vector_store %arg16[%c32_78, %c0_79], %138 {strides = array<i32>} : memref<112x32xf32, #tpu.memory_space<vmem>>, vector<2x32xf32>,
    %c34 = arith.constant 34 : index
    %c0_80 = arith.constant 0 : index
    %140 = vector.load %arg16[%c34, %c0_80] : memref<112x32xf32, #tpu.memory_space<vmem>>, vector<24x32xf32>
    tpu.vector_store %arg16[%c34, %c0_80], %137 {strides = array<i32>} : memref<112x32xf32, #tpu.memory_space<vmem>>, vector<24x32xf32>,
    %cst_81 = arith.constant 0.000000e+00 : f32
    %141 = vector.broadcast %cst_81 : f32 to vector<2x32xf32>
    %c58 = arith.constant 58 : index
    %c0_82 = arith.constant 0 : index
    %142 = vector.load %arg16[%c58, %c0_82] : memref<112x32xf32, #tpu.memory_space<vmem>>, vector<2x32xf32>
    tpu.vector_store %arg16[%c58, %c0_82], %141 {strides = array<i32>} : memref<112x32xf32, #tpu.memory_space<vmem>>, vector<2x32xf32>,
    %c32_83 = arith.constant 32 : index
    %c0_84 = arith.constant 0 : index
    %143 = tpu.strided_load %arg16[%c32_83, %c0_84] {strides = array<i32: 4, 1>} : memref<112x32xf32, #tpu.memory_space<vmem>>, vector<7x32xf32>
    %c33_85 = arith.constant 33 : index
    %c0_86 = arith.constant 0 : index
    %144 = tpu.strided_load %arg16[%c33_85, %c0_86] {strides = array<i32: 4, 1>} : memref<112x32xf32, #tpu.memory_space<vmem>>, vector<7x32xf32>
    %c34_87 = arith.constant 34 : index
    %c0_88 = arith.constant 0 : index
    %145 = tpu.strided_load %arg16[%c34_87, %c0_88] {strides = array<i32: 4, 1>} : memref<112x32xf32, #tpu.memory_space<vmem>>, vector<7x32xf32>
    %c35 = arith.constant 35 : index
    %c0_89 = arith.constant 0 : index
    %146 = tpu.strided_load %arg16[%c35, %c0_89] {strides = array<i32: 4, 1>} : memref<112x32xf32, #tpu.memory_space<vmem>>, vector<7x32xf32>
    %147 = tpu.concatenate %143, %144, %145, %146 in 1 : vector<7x32xf32>, vector<7x32xf32>, vector<7x32xf32>, vector<7x32xf32> -> vector<7x128xf32>
    %c0_90 = arith.constant 0 : index
    %c0_91 = arith.constant 0 : index
    %148 = vector.load %arg6[%c0_90, %c0_91] : memref<128x32xf32, #tpu.memory_space<vmem>>, vector<128x32xf32>
    %cst_92 = arith.constant dense<0.000000e+00> : vector<7x32xf32>
    %149 = tpu.matmul %147, %148, %cst_92 {dimension_numbers = #tpu.dot_dimension_numbers<[1], [0], [0], [1], [0, 0, 1, 1], [], []>} : vector<7x128xf32>, vector<128x32xf32>, vector<7x32xf32> -> vector<7x32xf32>
    %150 = vector.broadcast %114 : vector<1x32xf32> to vector<7x32xf32>
    %151 = arith.addf %149, %150 : vector<7x32xf32>
    %152 = math.tanh %151 : vector<7x32xf32>
    %cst_93 = arith.constant 0.000000e+00 : f32
    %153 = vector.broadcast %cst_93 : f32 to vector<6x32xf32>
    %c64_94 = arith.constant 64 : index
    %c0_95 = arith.constant 0 : index
    %154 = vector.load %arg16[%c64_94, %c0_95] : memref<112x32xf32, #tpu.memory_space<vmem>>, vector<6x32xf32>
    tpu.vector_store %arg16[%c64_94, %c0_95], %153 {strides = array<i32>} : memref<112x32xf32, #tpu.memory_space<vmem>>, vector<6x32xf32>,
    %c70_96 = arith.constant 70 : index
    %c0_97 = arith.constant 0 : index
    %155 = vector.load %arg16[%c70_96, %c0_97] : memref<112x32xf32, #tpu.memory_space<vmem>>, vector<7x32xf32>
    tpu.vector_store %arg16[%c70_96, %c0_97], %152 {strides = array<i32>} : memref<112x32xf32, #tpu.memory_space<vmem>>, vector<7x32xf32>,
    %c64_98 = arith.constant 64 : index
    %c0_99 = arith.constant 0 : index
    %156 = vector.load %arg16[%c64_98, %c0_99] : memref<112x32xf32, #tpu.memory_space<vmem>>, vector<7x32xf32>
    %c65_100 = arith.constant 65 : index
    %c0_101 = arith.constant 0 : index
    %157 = vector.load %arg16[%c65_100, %c0_101] : memref<112x32xf32, #tpu.memory_space<vmem>>, vector<7x32xf32>
    %c66_102 = arith.constant 66 : index
    %c0_103 = arith.constant 0 : index
    %158 = vector.load %arg16[%c66_102, %c0_103] : memref<112x32xf32, #tpu.memory_space<vmem>>, vector<7x32xf32>
    %c67_104 = arith.constant 67 : index
    %c0_105 = arith.constant 0 : index
    %159 = vector.load %arg16[%c67_104, %c0_105] : memref<112x32xf32, #tpu.memory_space<vmem>>, vector<7x32xf32>
    %c68_106 = arith.constant 68 : index
    %c0_107 = arith.constant 0 : index
    %160 = vector.load %arg16[%c68_106, %c0_107] : memref<112x32xf32, #tpu.memory_space<vmem>>, vector<7x32xf32>
    %c69_108 = arith.constant 69 : index
    %c0_109 = arith.constant 0 : index
    %161 = vector.load %arg16[%c69_108, %c0_109] : memref<112x32xf32, #tpu.memory_space<vmem>>, vector<7x32xf32>
    %c70_110 = arith.constant 70 : index
    %c0_111 = arith.constant 0 : index
    %162 = vector.load %arg16[%c70_110, %c0_111] : memref<112x32xf32, #tpu.memory_space<vmem>>, vector<7x32xf32>
    %163 = tpu.concatenate %156, %157, %158, %159, %160, %161, %162 in 1 : vector<7x32xf32>, vector<7x32xf32>, vector<7x32xf32>, vector<7x32xf32>, vector<7x32xf32>, vector<7x32xf32>, vector<7x32xf32> -> vector<7x224xf32>
    %c0_112 = arith.constant 0 : index
    %c0_113 = arith.constant 0 : index
    %164 = vector.load %arg7[%c0_112, %c0_113] : memref<224x32xf32, #tpu.memory_space<vmem>>, vector<224x32xf32>
    %cst_114 = arith.constant dense<0.000000e+00> : vector<7x32xf32>
    %165 = tpu.matmul %163, %164, %cst_114 {dimension_numbers = #tpu.dot_dimension_numbers<[1], [0], [0], [1], [0, 0, 1, 1], [], []>} : vector<7x224xf32>, vector<224x32xf32>, vector<7x32xf32> -> vector<7x32xf32>
    %166 = vector.broadcast %115 : vector<1x32xf32> to vector<7x32xf32>
    %167 = arith.addf %165, %166 : vector<7x32xf32>
    %168 = math.tanh %167 : vector<7x32xf32>
    %169 = arith.addf %168, %152 : vector<7x32xf32>
    %cst_115 = arith.constant dense<0.000000e+00> : vector<7xf32>
    %170 = vector.multi_reduction <add>, %169, %cst_115 [1] : vector<7x32xf32> to vector<7xf32>
    %171 = vector.shape_cast %170 : vector<7xf32> to vector<7x1xf32>
    %cst_116 = arith.constant 3.200000e+01 : f32
    %172 = vector.broadcast %cst_116 : f32 to vector<7x1xf32>
    %173 = arith.divf %171, %172 : vector<7x1xf32>
    %174 = vector.broadcast %173 : vector<7x1xf32> to vector<7x32xf32>
    %175 = arith.subf %169, %174 : vector<7x32xf32>
    %176 = arith.mulf %175, %175 : vector<7x32xf32>
    %cst_117 = arith.constant dense<0.000000e+00> : vector<7xf32>
    %177 = vector.multi_reduction <add>, %176, %cst_117 [1] : vector<7x32xf32> to vector<7xf32>
    %178 = vector.shape_cast %177 : vector<7xf32> to vector<7x1xf32>
    %cst_118 = arith.constant 3.200000e+01 : f32
    %179 = vector.broadcast %cst_118 : f32 to vector<7x1xf32>
    %180 = arith.divf %178, %179 : vector<7x1xf32>
    %cst_119 = arith.constant 9.99999974E-6 : f32
    %181 = vector.broadcast %cst_119 : f32 to vector<7x1xf32>
    %182 = arith.addf %180, %181 : vector<7x1xf32>
    %183 = math.rsqrt %182 : vector<7x1xf32>
    %184 = vector.broadcast %183 : vector<7x1xf32> to vector<7x32xf32>
    %185 = arith.mulf %175, %184 : vector<7x32xf32>
    %186 = vector.broadcast %1 : vector<1x32xf32> to vector<7x32xf32>
    %187 = arith.mulf %185, %186 : vector<7x32xf32>
    %188 = vector.broadcast %2 : vector<1x32xf32> to vector<7x32xf32>
    %189 = arith.addf %187, %188 : vector<7x32xf32>
    %c0_120 = arith.constant 0 : index
    %c0_121 = arith.constant 0 : index
    %190 = vector.load %arg8[%c0_120, %c0_121] : memref<32x128xf32, #tpu.memory_space<vmem>>, vector<32x128xf32>
    %cst_122 = arith.constant dense<0.000000e+00> : vector<7x128xf32>
    %191 = tpu.matmul %189, %190, %cst_122 {dimension_numbers = #tpu.dot_dimension_numbers<[1], [0], [0], [1], [0, 0, 1, 1], [], []>} : vector<7x32xf32>, vector<32x128xf32>, vector<7x128xf32> -> vector<7x128xf32>
    %192 = vector.extract_strided_slice %191 {offsets = [0, 0], sizes = [7, 32], strides = [1, 1]} : vector<7x128xf32> to vector<7x32xf32>
    %c80 = arith.constant 80 : index
    %c0_123 = arith.constant 0 : index
    %193 = tpu.strided_load %arg16[%c80, %c0_123] {strides = array<i32: 4, 1>} : memref<112x32xf32, #tpu.memory_space<vmem>>, vector<7x32xf32>
    tpu.strided_store %arg16[%c80, %c0_123], %192 {strides = array<i32: 4, 1>} : memref<112x32xf32, #tpu.memory_space<vmem>>, vector<7x32xf32>
    %194 = vector.extract_strided_slice %191 {offsets = [0, 32], sizes = [7, 32], strides = [1, 1]} : vector<7x128xf32> to vector<7x32xf32>
    %c81 = arith.constant 81 : index
    %c0_124 = arith.constant 0 : index
    %195 = tpu.strided_load %arg16[%c81, %c0_124] {strides = array<i32: 4, 1>} : memref<112x32xf32, #tpu.memory_space<vmem>>, vector<7x32xf32>
    tpu.strided_store %arg16[%c81, %c0_124], %194 {strides = array<i32: 4, 1>} : memref<112x32xf32, #tpu.memory_space<vmem>>, vector<7x32xf32>
    %196 = vector.extract_strided_slice %191 {offsets = [0, 64], sizes = [7, 32], strides = [1, 1]} : vector<7x128xf32> to vector<7x32xf32>
    %c82 = arith.constant 82 : index
    %c0_125 = arith.constant 0 : index
    %197 = tpu.strided_load %arg16[%c82, %c0_125] {strides = array<i32: 4, 1>} : memref<112x32xf32, #tpu.memory_space<vmem>>, vector<7x32xf32>
    tpu.strided_store %arg16[%c82, %c0_125], %196 {strides = array<i32: 4, 1>} : memref<112x32xf32, #tpu.memory_space<vmem>>, vector<7x32xf32>
    %198 = vector.extract_strided_slice %191 {offsets = [0, 96], sizes = [7, 32], strides = [1, 1]} : vector<7x128xf32> to vector<7x32xf32>
    %c83 = arith.constant 83 : index
    %c0_126 = arith.constant 0 : index
    %199 = tpu.strided_load %arg16[%c83, %c0_126] {strides = array<i32: 4, 1>} : memref<112x32xf32, #tpu.memory_space<vmem>>, vector<7x32xf32>
    tpu.strided_store %arg16[%c83, %c0_126], %198 {strides = array<i32: 4, 1>} : memref<112x32xf32, #tpu.memory_space<vmem>>, vector<7x32xf32>
    %c80_127 = arith.constant 80 : index
    %c0_128 = arith.constant 0 : index
    %200 = vector.load %arg16[%c80_127, %c0_128] : memref<112x32xf32, #tpu.memory_space<vmem>>, vector<24x32xf32>
    %201 = vector.broadcast %116 : vector<1x32xf32> to vector<24x32xf32>
    %202 = arith.addf %200, %201 : vector<24x32xf32>
    %203 = math.tanh %202 : vector<24x32xf32>
    %204 = arith.addf %203, %137 : vector<24x32xf32>
    %cst_129 = arith.constant dense<0.000000e+00> : vector<24xf32>
    %205 = vector.multi_reduction <add>, %204, %cst_129 [1] : vector<24x32xf32> to vector<24xf32>
    %206 = vector.shape_cast %205 : vector<24xf32> to vector<24x1xf32>
    %cst_130 = arith.constant 3.200000e+01 : f32
    %207 = vector.broadcast %cst_130 : f32 to vector<24x1xf32>
    %208 = arith.divf %206, %207 : vector<24x1xf32>
    %209 = vector.broadcast %208 : vector<24x1xf32> to vector<24x32xf32>
    %210 = arith.subf %204, %209 : vector<24x32xf32>
    %211 = arith.mulf %210, %210 : vector<24x32xf32>
    %cst_131 = arith.constant dense<0.000000e+00> : vector<24xf32>
    %212 = vector.multi_reduction <add>, %211, %cst_131 [1] : vector<24x32xf32> to vector<24xf32>
    %213 = vector.shape_cast %212 : vector<24xf32> to vector<24x1xf32>
    %cst_132 = arith.constant 3.200000e+01 : f32
    %214 = vector.broadcast %cst_132 : f32 to vector<24x1xf32>
    %215 = arith.divf %213, %214 : vector<24x1xf32>
    %cst_133 = arith.constant 9.99999974E-6 : f32
    %216 = vector.broadcast %cst_133 : f32 to vector<24x1xf32>
    %217 = arith.addf %215, %216 : vector<24x1xf32>
    %218 = math.rsqrt %217 : vector<24x1xf32>
    %219 = vector.broadcast %218 : vector<24x1xf32> to vector<24x32xf32>
    %220 = arith.mulf %210, %219 : vector<24x32xf32>
    %221 = vector.broadcast %1 : vector<1x32xf32> to vector<24x32xf32>
    %222 = arith.mulf %220, %221 : vector<24x32xf32>
    %223 = vector.broadcast %2 : vector<1x32xf32> to vector<24x32xf32>
    %224 = arith.addf %222, %223 : vector<24x32xf32>
    %225 = tpu.concatenate %113, %224 in 1 : vector<24x32xf32>, vector<24x32xf32> -> vector<24x64xf32>
    %c0_134 = arith.constant 0 : index
    %c0_135 = arith.constant 0 : index
    %226 = vector.load %arg9[%c0_134, %c0_135] : memref<64x32xf32, #tpu.memory_space<vmem>>, vector<64x32xf32>
    %cst_136 = arith.constant dense<0.000000e+00> : vector<24x32xf32>
    %227 = tpu.matmul %225, %226, %cst_136 {dimension_numbers = #tpu.dot_dimension_numbers<[1], [0], [0], [1], [0, 0, 1, 1], [], []>} : vector<24x64xf32>, vector<64x32xf32>, vector<24x32xf32> -> vector<24x32xf32>
    %228 = vector.broadcast %7 : vector<1x32xf32> to vector<24x32xf32>
    %229 = arith.addf %227, %228 : vector<24x32xf32>
    %cst_137 = arith.constant dense<0.000000e+00> : vector<24xf32>
    %230 = vector.multi_reduction <add>, %229, %cst_137 [1] : vector<24x32xf32> to vector<24xf32>
    %231 = vector.shape_cast %230 : vector<24xf32> to vector<24x1xf32>
    %cst_138 = arith.constant 3.200000e+01 : f32
    %232 = vector.broadcast %cst_138 : f32 to vector<24x1xf32>
    %233 = arith.divf %231, %232 : vector<24x1xf32>
    %234 = vector.broadcast %233 : vector<24x1xf32> to vector<24x32xf32>
    %235 = arith.subf %229, %234 : vector<24x32xf32>
    %236 = arith.mulf %235, %235 : vector<24x32xf32>
    %cst_139 = arith.constant dense<0.000000e+00> : vector<24xf32>
    %237 = vector.multi_reduction <add>, %236, %cst_139 [1] : vector<24x32xf32> to vector<24xf32>
    %238 = vector.shape_cast %237 : vector<24xf32> to vector<24x1xf32>
    %cst_140 = arith.constant 3.200000e+01 : f32
    %239 = vector.broadcast %cst_140 : f32 to vector<24x1xf32>
    %240 = arith.divf %238, %239 : vector<24x1xf32>
    %cst_141 = arith.constant 9.99999974E-6 : f32
    %241 = vector.broadcast %cst_141 : f32 to vector<24x1xf32>
    %242 = arith.addf %240, %241 : vector<24x1xf32>
    %243 = math.rsqrt %242 : vector<24x1xf32>
    %244 = vector.broadcast %243 : vector<24x1xf32> to vector<24x32xf32>
    %245 = arith.mulf %235, %244 : vector<24x32xf32>
    %246 = vector.broadcast %3 : vector<1x32xf32> to vector<24x32xf32>
    %247 = arith.mulf %245, %246 : vector<24x32xf32>
    %248 = vector.broadcast %4 : vector<1x32xf32> to vector<24x32xf32>
    %249 = arith.addf %247, %248 : vector<24x32xf32>
    %c0_142 = arith.constant 0 : index
    %c0_143 = arith.constant 0 : index
    %250 = vector.load %arg10[%c0_142, %c0_143] : memref<32x128xf32, #tpu.memory_space<vmem>>, vector<32x128xf32>
    %cst_144 = arith.constant dense<0.000000e+00> : vector<24x128xf32>
    %251 = tpu.matmul %249, %250, %cst_144 {dimension_numbers = #tpu.dot_dimension_numbers<[1], [0], [0], [1], [0, 0, 1, 1], [], []>} : vector<24x32xf32>, vector<32x128xf32>, vector<24x128xf32> -> vector<24x128xf32>
    %c0_145 = arith.constant 0 : index
    %c0_146 = arith.constant 0 : index
    %252 = vector.load %arg11[%c0_145, %c0_146] : memref<128x32xf32, #tpu.memory_space<vmem>>, vector<128x32xf32>
    %cst_147 = arith.constant dense<0.000000e+00> : vector<24x32xf32>
    %253 = tpu.matmul %251, %252, %cst_147 {dimension_numbers = #tpu.dot_dimension_numbers<[1], [0], [0], [1], [0, 0, 1, 1], [], []>} : vector<24x128xf32>, vector<128x32xf32>, vector<24x32xf32> -> vector<24x32xf32>
    %254 = vector.broadcast %8 : vector<1x32xf32> to vector<24x32xf32>
    %255 = arith.addf %253, %254 : vector<24x32xf32>
    %256 = arith.addf %229, %255 : vector<24x32xf32>
    %cst_148 = arith.constant dense<0.000000e+00> : vector<24xf32>
    %257 = vector.multi_reduction <add>, %256, %cst_148 [1] : vector<24x32xf32> to vector<24xf32>
    %258 = vector.shape_cast %257 : vector<24xf32> to vector<24x1xf32>
    %cst_149 = arith.constant 3.200000e+01 : f32
    %259 = vector.broadcast %cst_149 : f32 to vector<24x1xf32>
    %260 = arith.divf %258, %259 : vector<24x1xf32>
    %261 = vector.broadcast %260 : vector<24x1xf32> to vector<24x32xf32>
    %262 = arith.subf %256, %261 : vector<24x32xf32>
    %263 = arith.mulf %262, %262 : vector<24x32xf32>
    %cst_150 = arith.constant dense<0.000000e+00> : vector<24xf32>
    %264 = vector.multi_reduction <add>, %263, %cst_150 [1] : vector<24x32xf32> to vector<24xf32>
    %265 = vector.shape_cast %264 : vector<24xf32> to vector<24x1xf32>
    %cst_151 = arith.constant 3.200000e+01 : f32
    %266 = vector.broadcast %cst_151 : f32 to vector<24x1xf32>
    %267 = arith.divf %265, %266 : vector<24x1xf32>
    %cst_152 = arith.constant 9.99999974E-6 : f32
    %268 = vector.broadcast %cst_152 : f32 to vector<24x1xf32>
    %269 = arith.addf %267, %268 : vector<24x1xf32>
    %270 = math.rsqrt %269 : vector<24x1xf32>
    %271 = vector.broadcast %270 : vector<24x1xf32> to vector<24x32xf32>
    %272 = arith.mulf %262, %271 : vector<24x32xf32>
    %273 = vector.broadcast %5 : vector<1x32xf32> to vector<24x32xf32>
    %274 = arith.mulf %272, %273 : vector<24x32xf32>
    %275 = vector.broadcast %6 : vector<1x32xf32> to vector<24x32xf32>
    %276 = arith.addf %274, %275 : vector<24x32xf32>
    %c0_153 = arith.constant 0 : index
    %c0_154 = arith.constant 0 : index
    %277 = vector.load %arg12[%c0_153, %c0_154] : memref<32x128xf32, #tpu.memory_space<vmem>>, vector<32x128xf32>
    %cst_155 = arith.constant dense<0.000000e+00> : vector<24x128xf32>
    %278 = tpu.matmul %276, %277, %cst_155 {dimension_numbers = #tpu.dot_dimension_numbers<[1], [0], [0], [1], [0, 0, 1, 1], [], []>} : vector<24x32xf32>, vector<32x128xf32>, vector<24x128xf32> -> vector<24x128xf32>
    %c0_156 = arith.constant 0 : index
    %c0_157 = arith.constant 0 : index
    %279 = vector.load %arg13[%c0_156, %c0_157] : memref<1x128xf32, #tpu.memory_space<vmem>>, vector<1x128xf32>
    %280 = vector.broadcast %279 : vector<1x128xf32> to vector<24x128xf32>
    %281 = arith.addf %278, %280 : vector<24x128xf32>
    %c0_158 = arith.constant 0 : index
    %c0_159 = arith.constant 0 : index
    %c0_160 = arith.constant 0 : index
    %282 = vector.load %arg14[%c0_158, %c0_159, %c0_160] : memref<1x24x128xf32, #tpu.memory_space<vmem>>, vector<1x24x128xf32>
    %283 = vector.shape_cast %282 : vector<1x24x128xf32> to vector<24x128xf32>
    %284 = vector.shape_cast %281 : vector<24x128xf32> to vector<1x24x128xf32>
    tpu.vector_store %arg14[%c0_158, %c0_159, %c0_160], %284 {strides = array<i32>} : memref<1x24x128xf32, #tpu.memory_space<vmem>>, vector<1x24x128xf32>,
    return
  }
  func.func @transform_0(%arg0: i32) -> (i32, i32, i32) {
    %c0_i32 = arith.constant 0 : i32
    %c0_i32_0 = arith.constant 0 : i32
    %c0_i32_1 = arith.constant 0 : i32
    return %arg0, %c0_i32, %c0_i32_0 : i32, i32, i32
  }
  func.func @transform_1(%arg0: i32) -> (i32, i32) {
    %c0_i32 = arith.constant 0 : i32
    %c0_i32_0 = arith.constant 0 : i32
    %c0_i32_1 = arith.constant 0 : i32
    return %c0_i32, %c0_i32_0 : i32, i32
  }
  func.func @transform_2(%arg0: i32) -> (i32, i32) {
    %c0_i32 = arith.constant 0 : i32
    %c0_i32_0 = arith.constant 0 : i32
    %c0_i32_1 = arith.constant 0 : i32
    return %c0_i32, %c0_i32_0 : i32, i32
  }
  func.func @transform_3(%arg0: i32) -> (i32, i32) {
    %c0_i32 = arith.constant 0 : i32
    %c0_i32_0 = arith.constant 0 : i32
    %c0_i32_1 = arith.constant 0 : i32
    return %c0_i32, %c0_i32_0 : i32, i32
  }
  func.func @transform_4(%arg0: i32) -> (i32, i32) {
    %c0_i32 = arith.constant 0 : i32
    %c0_i32_0 = arith.constant 0 : i32
    %c0_i32_1 = arith.constant 0 : i32
    return %c0_i32, %c0_i32_0 : i32, i32
  }
  func.func @transform_5(%arg0: i32) -> (i32, i32) {
    %c0_i32 = arith.constant 0 : i32
    %c0_i32_0 = arith.constant 0 : i32
    %c0_i32_1 = arith.constant 0 : i32
    return %c0_i32, %c0_i32_0 : i32, i32
  }
  func.func @transform_6(%arg0: i32) -> (i32, i32) {
    %c0_i32 = arith.constant 0 : i32
    %c0_i32_0 = arith.constant 0 : i32
    %c0_i32_1 = arith.constant 0 : i32
    return %c0_i32, %c0_i32_0 : i32, i32
  }
  func.func @transform_7(%arg0: i32) -> (i32, i32) {
    %c0_i32 = arith.constant 0 : i32
    %c0_i32_0 = arith.constant 0 : i32
    %c0_i32_1 = arith.constant 0 : i32
    return %c0_i32, %c0_i32_0 : i32, i32
  }
  func.func @transform_8(%arg0: i32) -> (i32, i32) {
    %c0_i32 = arith.constant 0 : i32
    %c0_i32_0 = arith.constant 0 : i32
    %c0_i32_1 = arith.constant 0 : i32
    return %c0_i32, %c0_i32_0 : i32, i32
  }
  func.func @transform_9(%arg0: i32) -> (i32, i32) {
    %c0_i32 = arith.constant 0 : i32
    %c0_i32_0 = arith.constant 0 : i32
    %c0_i32_1 = arith.constant 0 : i32
    return %c0_i32, %c0_i32_0 : i32, i32
  }
  func.func @transform_10(%arg0: i32) -> (i32, i32) {
    %c0_i32 = arith.constant 0 : i32
    %c0_i32_0 = arith.constant 0 : i32
    %c0_i32_1 = arith.constant 0 : i32
    return %c0_i32, %c0_i32_0 : i32, i32
  }
  func.func @transform_11(%arg0: i32) -> (i32, i32) {
    %c0_i32 = arith.constant 0 : i32
    %c0_i32_0 = arith.constant 0 : i32
    %c0_i32_1 = arith.constant 0 : i32
    return %c0_i32, %c0_i32_0 : i32, i32
  }
  func.func @transform_12(%arg0: i32) -> (i32, i32) {
    %c0_i32 = arith.constant 0 : i32
    %c0_i32_0 = arith.constant 0 : i32
    %c0_i32_1 = arith.constant 0 : i32
    return %c0_i32, %c0_i32_0 : i32, i32
  }
  func.func @transform_13(%arg0: i32) -> (i32, i32, i32) {
    %c0_i32 = arith.constant 0 : i32
    %c0_i32_0 = arith.constant 0 : i32
    %c0_i32_1 = arith.constant 0 : i32
    return %arg0, %c0_i32, %c0_i32_0 : i32, i32, i32
  }
}

</mosaic_0001>

<bundles_post_ra>
// kernel: seasonal_prediction_forward.1
= control target key start
LH: loop header
LB: loop body
LE: loop exit
PB: predicated region body
PF: predicated region fallthrough
CT: control target
= control target key end

     0   :  { %s2695_s25 = smov 0   ;;  %s3608_s0 = inlined_call_operand.vmem [shape: f32[2,24,32], index: 0, kind: input, shape index: {}]   ;;  %s3609_s1 = inlined_call_operand.vmem [shape: f32[16,32], index: 1, kind: input, shape index: {}]   ;;  %s3610_s2 = inlined_call_operand.vmem [shape: f32[64,32], index: 2, kind: input, shape index: {}]   ;;  %s3611_s3 = inlined_call_operand.vmem [shape: f32[416,32], index: 3, kind: input, shape index: {}]   ;;  %s3612_s4 = inlined_call_operand.vmem [shape: f32[32,64], index: 4, kind: input, shape index: {}]   ;;  %s3613_s5 = inlined_call_operand.vmem [shape: f32[128,32], index: 5, kind: input, shape index: {}]   ;;  %s3614_s6 = inlined_call_operand.vmem [shape: f32[224,32], index: 6, kind: input, shape index: {}]   ;;  %s3615_s7 = inlined_call_operand.vmem [shape: f32[32,128], index: 7, kind: input, shape index: {}]   ;;  %s3616_s8 = inlined_call_operand.vmem [shape: f32[64,32], index: 8, kind: input, shape index: {}]   ;;  %s3617_s9 = inlined_call_operand.vmem [shape: f32[32,128], index: 9, kind: input, shape index: {}]   ;;  %s3618_s10 = inlined_call_operand.vmem [shape: f32[128,32], index: 10, kind: input, shape index: {}]   ;;  %s3619_s11 = inlined_call_operand.vmem [shape: f32[32,128], index: 11, kind: input, shape index: {}]   ;;  %s3620_s12 = inlined_call_operand.vmem [shape: f32[1,128], index: 12, kind: input, shape index: {}]   ;;  %s3621_s13 = inlined_call_operand.vmem [shape: f32[2,24,128], index: 13, kind: output, shape index: {}]  }
   0x1 LB: > { %s2190_s26 = sadd.s32 4294967295, %s2618_s25   ;;  %p2194_p0 = scmp.ge.s32.totalorder %s2618_s25, 1  ;;  %s2618_s25 = sphi %s2695_s25, %s23_s25  }
   0x2   : > { %p387_p1 = scmp.lt.s32.totalorder %s2618_s25, 3 }
   0x4   : > { %p388_p2 = pnand %p2194_p0, %p387_p1 }
   0x5   : > { %p431_p3 = scmp.lt.s32.totalorder (!%p388_p2), %s2190_s26, 1  ;;  %s2621_s15 = smov (!%p388_p2), 32  }
   0x6   : > { %391 = sbr.rel (%p388_p2) target bundleno = 3788 (0xecc), region = 72  ;;  %s2622_s28 = smov (!%p388_p2), 96  }
   0x7   : > { %s2623_s18 = smov (!%p388_p2), 64  }
   0xb   : > { %vm446_vm0 = vcmask 253952   ;;  %vm450_vm1 = vcmask 261120   ;;  %v2620_v0 = vmov 0.0   ;;  %v505_v1 = vld [vmem:[%s3610_s2 + $0x38] sm:$0xff]  ;;  %v504_v2 = vld [vmem:[%s3610_s2 + $0x30] sm:$0xff]  ;;  %s3623_s26 = smov (!%p431_p3, %s2190_s26), 1  ;;  %v506_v41 = vlaneseq }
   0xc   : > { %479 = vst.msk [vmem:[#allocation2 + $0x39] sm:$0x1] %vm446_vm0, %v2620_v0  ;;  %475 = vst.msk [vmem:[#allocation2 + $0x20] sm:$0x1] %vm446_vm0, %v2620_v0  ;;  %2337 = vmatprep.subr.mxu0 %v505_v1  ;;  %v503_v3 = vld [vmem:[%s3610_s2 + $0x28] sm:$0xff]  ;;  %s2513_s16 = smul.u32 24, %s3623_s26 }
   0xd   : > { %594 = vst.msk [vmem:[#allocation2 + $0x40] sm:$0xff] %vm450_vm1, %v2620_v0  ;;  %2338 = vmatpush3.msra.mxu0 %v505_v1  ;;  %vm448_vm2 = vcmask 261127   ;;  %v502_v4 = vld [vmem:[%s3610_s2 + $0x20] sm:$0xff]  ;;  %v501_v5 = vld [vmem:[%s3610_s2 + $0x18] sm:$0xff]  ;;  %v500_v9 = vld [vmem:[%s3610_s2 + $0x10] sm:$0xff]  ;;  %vm510_vm3 = vcmask 523264  }
   0xe   : > { %2339 = vmatprep.subr.mxu0 %v504_v2  ;;  %s435_s21 = scalar_lea.vmem %s3608_s0, %s2513_s16  ;;  %v499_v24 = vld [vmem:[%s3610_s2 + $0x8] sm:$0xff]  ;;  %v498_v28 = vld [vmem:[%s3610_s2] sm:$0xff]  ;;  %v2784_v42 = vshrl.u32 %v506_v41, 7  ;;  %vm1138_vm4 = vcmask 254976   ;;  %vm595_vm5 = vcmask 257024   ;;  %v748_v47 = vld [vmem:[%s3611_s3 + $0xf8] sm:$0xff] }
   0xf   : > { %2340 = vmatpush3.msra.mxu0 %v504_v2  ;;  %v2732_v6 = vld [vmem:[%s435_s21] sm:$0xff]  ;;  %v2734_v7 = vld [vmem:[%s435_s21 + $0x8] sm:$0xff]  ;;  %v2736_v8 = vld [vmem:[%s435_s21 + $0x10] sm:$0xff]  ;;  %1181 = vst.msk [vmem:[#allocation3 + $0x20] sm:$0x3] %vm1138_vm4, %v2620_v0  ;;  %2227 = vmatprep.subr.mxu1 %v748_v47  ;;  %vm598_vm6 = vcmask 258048  }
  0x10   : > { %2341 = vmatprep.subr.mxu0 %v503_v3  ;;  %447 = vst.msk [vmem:[#allocation2] sm:$0x1] %vm446_vm0, %v2732_v6  ;;  %v2787_v43 = vsub.s32 0, %v2784_v42  ;;  %v1142_v45 = vsub.s32 7, %v2784_v42  ;;  %v732_v48 = vld [vmem:[%s3611_s3 + $0x78] sm:$0xff]  ;;  %v747_v49 = vld [vmem:[%s3611_s3 + $0xf0] sm:$0xff] }
  0x11   : > { %2342 = vmatpush3.msra.mxu0 %v503_v3  ;;  %449 = vst.msk [vmem:[#allocation2 + $0x12] sm:$0x80] %vm448_vm2, %v2736_v8  ;;  %v764_v50 = vld [vmem:[%s3611_s3 + $0x178] sm:$0xff]  ;;  %v731_v51 = vld [vmem:[%s3611_s3 + $0x70] sm:$0xff]  ;;  %2228 = vmatpush3.msra.mxu1 %v732_v48  ;;  %v746_v52 = vld [vmem:[%s3611_s3 + $0xe8] sm:$0xff]  ;;  %vm702_vm7 = vcmask 785408  }
  0x12   : > { %451 = vst.msk [vmem:[#allocation2 + $0x1] sm:$0xff] %vm450_vm1, %v2732_v6  ;;  %452 = vst.msk [vmem:[#allocation2 + $0x9] sm:$0xff] %vm450_vm1, %v2734_v7  ;;  %2343 = vmatprep.subr.mxu0 %v502_v4  ;;  %v1137_v44 = vrot.slane %v2732_v6, %v2787_v43  ;;  %v1143_v46 = vrot.slane %v2736_v8, %v1142_v45  ;;  %v763_v53 = vld [vmem:[%s3611_s3 + $0x170] sm:$0xff]  ;;  %2229 = vmatprep.subr.mxu1 %v747_v49  ;;  %v730_v54 = vld [vmem:[%s3611_s3 + $0x68] sm:$0xff]  ;;  %vm2624_vm8 = vmmov 0   ;;  %vm1300_vm9 = vcmask 259072  }
  0x13   : > { %453 = vst.msk [vmem:[#allocation2 + $0x11] sm:$0xff] %vm450_vm1, %v2736_v8  ;;  %1145 = vst.msk [vmem:[#allocation3 + $0x2] sm:$0xff] %vm450_vm1, %v2732_v6  ;;  %2344 = vmatpush3.msra.mxu0 %v502_v4  ;;  %v762_v55 = vld [vmem:[%s3611_s3 + $0x168] sm:$0xff]  ;;  %2230 = vmatpush3.msra.mxu1 %v731_v51  ;;  %v745_v56 = vld [vmem:[%s3611_s3 + $0xe0] sm:$0xff]  ;;  %vm1302_vm10 = vcmask 260096  }
  0x14   : > { %1146 = vst.msk [vmem:[#allocation3 + $0xa] sm:$0xff] %vm450_vm1, %v2734_v7  ;;  %1147 = vst.msk [vmem:[#allocation3 + $0x12] sm:$0xff] %vm450_vm1, %v2736_v8  ;;  %2345 = vmatprep.subr.mxu0 %v501_v5  ;;  %2231 = vmatprep.subr.mxu1 %v746_v52  ;;  %v729_v57 = vld [vmem:[%s3611_s3 + $0x60] sm:$0xff]  ;;  %v744_v59 = vld [vmem:[%s3611_s3 + $0xd8] sm:$0xff] }
  0x15   : > { %2346 = vmatpush3.msra.mxu0 %v501_v5  ;;  %1185 = vst.msk [vmem:[#allocation3 + $0x3a] sm:$0x3] %vm1138_vm4, %v2620_v0  ;;  %1139 = vst.msk [vmem:[#allocation3] sm:$0x3] %vm1138_vm4, %v1137_v44  ;;  %v761_v58 = vld [vmem:[%s3611_s3 + $0x160] sm:$0xff]  ;;  %2232 = vmatpush3.msra.mxu1 %v730_v54  ;;  %v728_v60 = vld [vmem:[%s3611_s3 + $0x58] sm:$0xff] }
  0x16   : > { %2347 = vmatprep.subr.mxu0 %v500_v9  ;;  %596 = vst.msk [vmem:[#allocation2 + $0x48] sm:$0xf] %vm595_vm5, %v2620_v0  ;;  %2233 = vmatprep.subr.mxu1 %v745_v56  ;;  %v760_v61 = vld [vmem:[%s3611_s3 + $0x158] sm:$0xff]  ;;  %v743_v62 = vld [vmem:[%s3611_s3 + $0xd0] sm:$0xff]  ;;  %v742_v2 = vld [vmem:[%s3611_s3 + $0xc8] sm:$0xff] }
  0x17   : > { %2348 = vmatpush3.msra.mxu0 %v500_v9  ;;  %1144 = vst.msk [vmem:[#allocation3 + $0x1a] sm:$0x3] %vm1138_vm4, %v1143_v46  ;;  %2234 = vmatpush3.msra.mxu1 %v729_v57  ;;  %v727_v63 = vld [vmem:[%s3611_s3 + $0x50] sm:$0xff]  ;;  %v726_v3 = vld [vmem:[%s3611_s3 + $0x48] sm:$0xff]  ;;  %v741_v5 = vld [vmem:[%s3611_s3 + $0xc0] sm:$0xff] }
  0x18   : > { %2349 = vmatprep.subr.mxu0 %v499_v24  ;;  %2235 = vmatprep.subr.mxu1 %v744_v59  ;;  %v759_v1 = vld [vmem:[%s3611_s3 + $0x150] sm:$0xff]  ;;  %v758_v4 = vld [vmem:[%s3611_s3 + $0x148] sm:$0xff]  ;;  %v725_v9 = vld [vmem:[%s3611_s3 + $0x40] sm:$0xff]  ;;  %1301 = vst.msk [vmem:[#allocation3 + $0x40] sm:$0x3f] %vm1300_vm9, %v2620_v0 }
  0x19   : > { %v454_v10 = vld [vmem:[#allocation2] sm:$0xff]  ;;  %v455_v11 = vld [vmem:[#allocation2 + $0x8] sm:$0xff]  ;;  %2350 = vmatpush3.msra.mxu0 %v499_v24  ;;  %2236 = vmatpush3.msra.mxu1 %v728_v60  ;;  %v768_v51 = vld [vmem:[%s3611_s3 + $0x198] sm:$0xff] }
  0x1a   : > { %v457_v12 = vld [vmem:[#allocation2 + $0x1] sm:$0xff]  ;;  %v458_v13 = vld [vmem:[#allocation2 + $0x9] sm:$0xff]  ;;  %v459_v19 = vld [vmem:[#allocation2 + $0x11] sm:$0xff]  ;;  %2351 = vmatprep.subr.mxu0 %v498_v28  ;;  %2237 = vmatprep.subr.mxu1 %v743_v62 }
  0x1b   : > { %v460_v14 = vadd.f32 %v457_v12, %v454_v10  ;;  %v463_v15 = vld [vmem:[#allocation2 + $0x2] sm:$0xff]  ;;  %v464_v16 = vld [vmem:[#allocation2 + $0xa] sm:$0xff]  ;;  %v461_v17 = vadd.f32 %v458_v13, %v455_v11  ;;  %v465_v20 = vld [vmem:[#allocation2 + $0x12] sm:$0xff]  ;;  %2352 = vmatpush3.msra.mxu0 %v498_v28  ;;  %2238 = vmatpush3.msra.mxu1 %v727_v63 }
  0x1c   : > { %v456_v18 = vld [vmem:[#allocation2 + $0x10] sm:$0xff]  ;;  %854 = vmatprep.subr.mxu0 %v2620_v0  ;;  %2239 = vmatprep.subr.mxu1 %v742_v2  ;;  %v757_v10 = vld [vmem:[%s3611_s3 + $0x140] sm:$0xff]  ;;  %v740_v11 = vld [vmem:[%s3611_s3 + $0xb8] sm:$0xff] }
  0x1d   : > { %v466_v21 = vadd.f32 %v463_v15, %v460_v14  ;;  %v462_v22 = vadd.f32 %v459_v19, %v456_v18  ;;  %v467_v23 = vadd.f32 %v464_v16, %v461_v17  ;;  %2240 = vmatpush3.msra.mxu1 %v726_v3  ;;  %v724_v12 = vld [vmem:[%s3611_s3 + $0x38] sm:$0xff]  ;;  %v739_v14 = vld [vmem:[%s3611_s3 + $0xb0] sm:$0xff]  ;;  %v738_v17 = vld [vmem:[%s3611_s3 + $0xa8] sm:$0xff] }
  0x1e   : > { %2241 = vmatprep.subr.mxu1 %v741_v5  ;;  %v756_v13 = vld [vmem:[%s3611_s3 + $0x138] sm:$0xff]  ;;  %v723_v15 = vld [vmem:[%s3611_s3 + $0x30] sm:$0xff]  ;;  %v722_v18 = vld [vmem:[%s3611_s3 + $0x28] sm:$0xff] }
  0x1f   : > { %v469_v25 = vmul.f32 0.33333334, %v466_v21  ;;  %v468_v26 = vadd.f32 %v465_v20, %v462_v22  ;;  %v470_v27 = vmul.f32 0.33333334, %v467_v23  ;;  %2242 = vmatpush3.msra.mxu1 %v725_v9  ;;  %v755_v16 = vld [vmem:[%s3611_s3 + $0x130] sm:$0xff]  ;;  %v754_v19 = vld [vmem:[%s3611_s3 + $0x128] sm:$0xff] }
  0x20   : > { %2243 = vmatprep.subr.mxu1 %v740_v11  ;;  %v737_v20 = vld [vmem:[%s3611_s3 + $0xa0] sm:$0xff]  ;;  %v2914_v21 = vld [vmem:[%s3609_s1 + $0x8] sm:$0xff]  ;;  %v767_v63 = vld [vmem:[%s3611_s3 + $0x190] sm:$0xff] }
  0x21   : > { %v2763_v29 = vsub.f32 %v2732_v6, %v469_v25  ;;  %v471_v30 = vmul.f32 0.33333334, %v468_v26  ;;  %v2766_v31 = vsub.f32 %v2734_v7, %v470_v27  ;;  %2244 = vmatpush3.msra.mxu1 %v724_v12  ;;  %v509_v22 = vrot.slane %v2914_v21, %v2787_v43  ;;  %v721_v28 = vld [vmem:[%s3611_s3 + $0x20] sm:$0xff]  ;;  %v718_v41 = vld [vmem:[%s3611_s3 + $0x8] sm:$0xff] }
  0x22   : > { %2245 = vmatprep.subr.mxu1 %v739_v14  ;;  %v733_v44 = vld [vmem:[%s3611_s3 + $0x80] sm:$0xff]  ;;  %v750_v46 = vld [vmem:[%s3611_s3 + $0x108] sm:$0xff] }
  0x23   : > { %476 = vst.msk [vmem:[#allocation2 + $0x21] sm:$0xff] %vm450_vm1, %v2763_v29  ;;  %v2771_v32 = vsub.f32 %v2736_v8, %v471_v30  ;;  %477 = vst.msk [vmem:[#allocation2 + $0x29] sm:$0xff] %vm450_vm1, %v2766_v31  ;;  %2246 = vmatpush3.msra.mxu1 %v723_v15  ;;  %v736_v30 = vld [vmem:[%s3611_s3 + $0x98] sm:$0xff]  ;;  %v606_v47 = vld [vmem:[#allocation2 + $0x43] sm:$0xff] }
  0x24   : > { %2247 = vmatprep.subr.mxu1 %v738_v17  ;;  %v602_v48 = vld [vmem:[#allocation2 + $0x41] sm:$0xff] }
  0x25   : > { %478 = vst.msk [vmem:[#allocation2 + $0x31] sm:$0xff] %vm450_vm1, %v2771_v32  ;;  %2248 = vmatpush3.msra.mxu1 %v722_v18  ;;  %v717_v49 = vld [vmem:[%s3611_s3] sm:$0xff]  ;;  %v766_v3 = vld [vmem:[%s3611_s3 + $0x188] sm:$0xff] }
  0x26   : > { %2249 = vmatprep.subr.mxu1 %v737_v20  ;;  %v604_v57 = vld [vmem:[#allocation2 + $0x42] sm:$0xff] }
  0x27   : > { %2250 = vmatpush3.msra.mxu1 %v721_v28  ;;  %v765_v5 = vld [vmem:[%s3611_s3 + $0x180] sm:$0xff]  ;;  %v1149_v15 = vld [vmem:[#allocation3 + $0x8] sm:$0xff] }
  0x28   : > { %2251 = vmatprep.subr.mxu1 %v736_v30  ;;  %v1148_v14 = vld [vmem:[#allocation3] sm:$0xff]  ;;  %v1152_v20 = vld [vmem:[#allocation3 + $0x9] sm:$0xff]  ;;  %v1159_v30 = vld [vmem:[#allocation3 + $0x12] sm:$0xff] }
  0x29   : > { %v1158_v28 = vld [vmem:[#allocation3 + $0xa] sm:$0xff] }
  0x2a   : > { %v485_v33 = vld [vmem:[#allocation2 + $0x21] ss:$2 sm:$0xff]  ;;  %v481_v35 = vld [vmem:[#allocation2 + $0x20] ss:$2 sm:$0xff] }
  0x2b   : > { %490 = vrot.lane.b32.xlu0 %v485_v33, %s2621_s15  ;;  %v753_v33 = vld [vmem:[%s3611_s3 + $0x120] sm:$0xff] }
  0x2c   : > { %v487_v34 = vld [vmem:[#allocation2 + $0x31] ss:$2 sm:$0x1f]  ;;  %v483_v38 = vld [vmem:[#allocation2 + $0x30] ss:$2 sm:$0x1f] }
  0x2f   : > { %492 = vrot.lane.b32.xlu0 %v487_v34, %s2621_s15  ;;  %v720_v34 = vld [vmem:[%s3611_s3 + $0x18] sm:$0xff] }
  0x30   : > { %2252 = vmatpush3.msra.mxu1 %v720_v34  ;;  %v1164_v34 = vld [vmem:[#allocation3 + $0xb] sm:$0xff] }
  0x9d   : > { %v491_v36 = vpop.permute.xlu0 %490 }
  0x9e   : > { %v496_v37 = vsel %vm450_vm1, %v481_v35, %v491_v36  ;;  %v735_v35 = vld [vmem:[%s3611_s3 + $0x90] sm:$0xff]  ;;  %v752_v36 = vld [vmem:[%s3611_s3 + $0x118] sm:$0xff] }
  0x9f   : > { %2353 = vmatprep.mubr.msk.f32.mxu0 %vm510_vm3, %v496_v37  ;;  %2253 = vmatprep.subr.mxu1 %v735_v35  ;;  %v1165_v35 = vld [vmem:[#allocation3 + $0x13] sm:$0xff] }
  0xa1   : > { %v493_v39 = vpop.permute.xlu0 %492 }
  0xa2   : > { %v497_v40 = vsel %vm450_vm1, %v483_v38, %v493_v39  ;;  %v719_v38 = vld [vmem:[%s3611_s3 + $0x10] sm:$0xff]  ;;  %v734_v39 = vld [vmem:[%s3611_s3 + $0x88] sm:$0xff] }
  0xa3   : > { %2354 = vmatmul.mubr.msk.f32.vlgmr.msra.gmra.mxu0 %vm510_vm3, %v497_v40  ;;  %v751_v40 = vld [vmem:[%s3611_s3 + $0x110] sm:$0xff]  ;;  %2254 = vmatpush3.msra.mxu1 %v719_v38 }
  0xa4   : > { %855 = vmatpush1.msra.mxu0 %v764_v50  ;;  %2255 = vmatprep.subr.mxu1 %v734_v39  ;;  %v749_v50 = vld [vmem:[%s3611_s3 + $0x100] sm:$0xff] }
  0xa5   : > { %856 = vmatprep.subr.mxu0 %v2620_v0  ;;  %2256 = vmatpush3.msra.mxu1 %v718_v41  ;;  %v1170_v41 = vld [vmem:[#allocation3 + $0xc] sm:$0xff] }
  0xa6   : > { %857 = vmatpush1.msra.mxu0 %v763_v53  ;;  %2257 = vmatprep.subr.mxu1 %v733_v44  ;;  %v1171_v44 = vld [vmem:[#allocation3 + $0x14] sm:$0xff] }
  0xa7   : > { %858 = vmatprep.subr.mxu0 %v2620_v0  ;;  %2258 = vmatpush3.msra.mxu1 %v717_v49 }
  0xa8   : > { %859 = vmatpush1.msra.mxu0 %v762_v55  ;;  %2367 = vmatprep.subr.mxu1 %v2620_v0 }
  0xa9   : > { %860 = vmatprep.subr.mxu0 %v2620_v0 }
  0xaa   : > { %861 = vmatpush1.msra.mxu0 %v761_v58 }
  0xab   : > { %862 = vmatprep.subr.mxu0 %v2620_v0 }
  0xac   : > { %863 = vmatpush1.msra.mxu0 %v760_v61 }
  0xad   : > { %864 = vmatprep.subr.mxu0 %v2620_v0 }
  0xae   : > { %865 = vmatpush1.msra.mxu0 %v759_v1 }
  0xaf   : > { %866 = vmatprep.subr.mxu0 %v2620_v0 }
  0xb0   : > { %867 = vmatpush1.msra.mxu0 %v758_v4 }
  0xb1   : > { %868 = vmatprep.subr.mxu0 %v2620_v0 }
  0xb2   : > { %869 = vmatpush1.msra.mxu0 %v757_v10 }
  0xb3   : > { %870 = vmatprep.subr.mxu0 %v2620_v0 }
  0xb4   : > { %871 = vmatpush1.msra.mxu0 %v756_v13 }
  0xb5   : > { %872 = vmatprep.subr.mxu0 %v2620_v0 }
  0xb6   : > { %873 = vmatpush1.msra.mxu0 %v755_v16  ;;  %v1150_v16 = vld [vmem:[#allocation3 + $0x10] sm:$0xff] }
  0xb7   : > { %874 = vmatprep.subr.mxu0 %v2620_v0 }
  0xb8   : > { %875 = vmatpush1.msra.mxu0 %v754_v19  ;;  %v1151_v19 = vld [vmem:[#allocation3 + $0x1] sm:$0xff] }
  0xb9   : > { %876 = vmatprep.subr.mxu0 %v2620_v0 }
  0xba   : > { %877 = vmatpush1.msra.mxu0 %v753_v33  ;;  %v1163_v33 = vld [vmem:[#allocation3 + $0x3] sm:$0xff] }
  0xbb   : > { %878 = vmatprep.subr.mxu0 %v2620_v0 }
  0xbc   : > { %879 = vmatpush1.msra.mxu0 %v752_v36 }
  0xbd   : > { %880 = vmatprep.subr.mxu0 %v2620_v0 }
  0xbe   : > { %881 = vmatpush1.msra.mxu0 %v751_v40  ;;  %v1169_v40 = vld [vmem:[#allocation3 + $0x4] sm:$0xff] }
  0xbf   : > { %882 = vmatprep.subr.mxu0 %v2620_v0 }
  0xc0   : > { %883 = vmatpush1.msra.mxu0 %v750_v46 }
  0xc1   : > { %884 = vmatprep.subr.mxu0 %v2620_v0 }
  0xc2   : > { %885 = vmatpush1.msra.mxu0 %v749_v50 }
  0xc3   : > { %910 = vmatprep.subr.mxu0 %v2620_v0 }
  0xc4   : > { %911 = vmatpush2.msra.mxu0 %v768_v51 }
  0xc5   : > { %912 = vmatprep.subr.mxu0 %v2620_v0 }
  0xc6   : > { %913 = vmatpush2.msra.mxu0 %v767_v63 }
  0xc7   : > { %914 = vmatprep.subr.mxu0 %v2620_v0 }
  0xc8   : > { %915 = vmatpush2.msra.mxu0 %v766_v3 }
  0xc9   : > { %916 = vmatprep.subr.mxu0 %v2620_v0 }
  0xca   : > { %917 = vmatpush2.msra.mxu0 %v765_v5 }
 0x163   : > { %v2355_v23 = vpop.f32.mrf.mxu0 }
 0x164   : > { %v589_v24 = vadd.f32 %v2355_v23, %v509_v22  ;;  %v1154_v23 = vadd.f32 %v1151_v19, %v1148_v14  ;;  %v1224_v19 = vld [vmem:[%s3613_s5 + $0x78] sm:$0xff] }
 0x165   : > { %v583_v25 = vpop.f32.mrf.mxu0 }
 0x166   : > { %2557 = vtanh.f32 %v589_v24  ;;  %v584_v26 = vadd.f32 %v583_v25, %v509_v22  ;;  %v1153_v22 = vld [vmem:[#allocation3 + $0x11] sm:$0xff]  ;;  %v1155_v24 = vadd.f32 %v1152_v20, %v1149_v15 }
 0x167   : > { %v1156_v25 = vadd.f32 %v1153_v22, %v1150_v16 }
 0x168   : > { %2559 = vtanh.f32 %v584_v26  ;;  %v1157_v26 = vld [vmem:[#allocation3 + $0x2] sm:$0xff]  ;;  %v1161_v38 = vadd.f32 %v1158_v28, %v1155_v24 }
 0x169   : > { %v1160_v36 = vadd.f32 %v1157_v26, %v1154_v23  ;;  %v1162_v39 = vadd.f32 %v1159_v30, %v1156_v25  ;;  %v1223_v25 = vld [vmem:[%s3613_s5 + $0x70] sm:$0xff] }
 0x16b   : > { %v1166_v46 = vadd.f32 %v1163_v33, %v1160_v36  ;;  %v1222_v36 = vld [vmem:[%s3613_s5 + $0x68] sm:$0xff] }
 0x16d   : > { %v1172_v50 = vadd.f32 %v1169_v40, %v1166_v46 }
 0x173   : > { %v2918_v27 = vpop.eup %2557 }
 0x174   : > { %599 = vst.msk [vmem:[#allocation2 + $0x54] sm:$0x1f] %vm598_vm6, %v2918_v27 }
 0x175   : > { %v2940_v37 = vpop.eup %2559 }
 0x176   : > { %597 = vst.msk [vmem:[#allocation2 + $0x4c] sm:$0xff] %vm450_vm1, %v2940_v37 }
 0x17d   : > { %v624_v52 = vld [vmem:[#allocation2 + $0x4c] sm:$0xff] }
 0x17e   : > { %v614_v53 = vld [vmem:[#allocation2 + $0x47] sm:$0xff]  ;;  %2199 = vmatprep.mubr.msk.f32.mxu0 %vm450_vm1, %v624_v52  ;;  %v615_v11 = vld [vmem:[#allocation2 + $0x4f] sm:$0x1f] }
 0x17f   : > { %v610_v54 = vld [vmem:[#allocation2 + $0x45] sm:$0xff]  ;;  %v2537_v55 = vpack.i.bf16 %v606_v47, %v614_v53  ;;  %v613_v60 = vld [vmem:[#allocation2 + $0x4e] sm:$0x1f]  ;;  %v1167_v47 = vadd.f32 %v1164_v34, %v1161_v38  ;;  %v1175_v53 = vmul.f32 0.2, %v1172_v50 }
 0x180   : > { %v2527_v56 = vpack.i.bf16 %v602_v48, %v610_v54  ;;  %v612_v58 = vld [vmem:[#allocation2 + $0x46] sm:$0xff]  ;;  %v621_v17 = vld [vmem:[#allocation2 + $0x52] sm:$0x1f]  ;;  %v1168_v48 = vadd.f32 %v1165_v35, %v1162_v39 }
 0x181   : > { %v605_v59 = vld [vmem:[#allocation2 + $0x4a] sm:$0x1f]  ;;  %2538 = vrot.lane.b32.xlu0 %v2537_v55, %s2622_s28  ;;  %v2532_v61 = vpack.i.bf16 %v604_v57, %v612_v58  ;;  %v619_v49 = vld [vmem:[#allocation2 + $0x51] sm:$0x1f]  ;;  %v1173_v51 = vadd.f32 %v1170_v41, %v1167_v47  ;;  %v3003_v57 = vsub.f32 %v2732_v6, %v1175_v53  ;;  %v1220_v53 = vld [vmem:[%s3613_s5 + $0x58] sm:$0xff] }
 0x182   : > { %2528 = vrot.lane.b32.xlu1 %v2527_v56, %s2621_s15  ;;  %v2547_v62 = vpack.i.bf16 %v605_v59, %v613_v60  ;;  %v603_v1 = vld [vmem:[#allocation2 + $0x49] sm:$0x1f]  ;;  %v1174_v52 = vadd.f32 %v1171_v44, %v1168_v48  ;;  %v623_v56 = vld [vmem:[#allocation2 + $0x53] sm:$0x1f]  ;;  %v1221_v48 = vld [vmem:[%s3613_s5 + $0x60] sm:$0xff] }
 0x183   : > { %v611_v2 = vld [vmem:[#allocation2 + $0x4d] sm:$0x1f]  ;;  %v1176_v54 = vmul.f32 0.2, %v1173_v51  ;;  %1182 = vst.msk [vmem:[#allocation3 + $0x22] sm:$0xff] %vm450_vm1, %v3003_v57 }
 0x184   : > { %v2542_v4 = vpack.i.bf16 %v603_v1, %v611_v2  ;;  %v618_v9 = vld [vmem:[#allocation2 + $0x49] sm:$0xff]  ;;  %v1177_v55 = vmul.f32 0.2, %v1174_v52  ;;  %v600_v2 = vld [vmem:[#allocation2 + $0x40] sm:$0xff] }
 0x185   : > { %2548 = vrot.lane.b32.xlu0 %v2547_v62, %s2623_s18  ;;  %v607_v10 = vld [vmem:[#allocation2 + $0x4b] sm:$0x1f]  ;;  %v3006_v58 = vsub.f32 %v2734_v7, %v1176_v54 }
 0x186   : > { %2533 = vrot.lane.b32.xlu1 %v2532_v61, %s2623_s18  ;;  %v2552_v12 = vpack.i.bf16 %v607_v10, %v615_v11  ;;  %v622_v13 = vld [vmem:[#allocation2 + $0x4b] sm:$0xff]  ;;  %v3009_v59 = vsub.f32 %v2736_v8, %v1177_v55  ;;  %v625_v55 = vld [vmem:[#allocation2 + $0x54] sm:$0x1f] }
 0x187   : > { %v620_v18 = vld [vmem:[#allocation2 + $0x4a] sm:$0xff]  ;;  %1183 = vst.msk [vmem:[#allocation3 + $0x2a] sm:$0xff] %vm450_vm1, %v3006_v58 }
 0x188   : > { %1184 = vst.msk [vmem:[#allocation3 + $0x32] sm:$0xff] %vm450_vm1, %v3009_v59  ;;  %v608_v1 = vld [vmem:[#allocation2 + $0x44] sm:$0xff]  ;;  %v609_v23 = vld [vmem:[#allocation2 + $0x4c] sm:$0x1f] }
 0x189   : > { %676 = vrot.lane.b32.xlu0 %v618_v9, %s2621_s15  ;;  %v601_v24 = vld [vmem:[#allocation2 + $0x48] sm:$0x1f] }
 0x18a   : > { %2543 = vrot.lane.b32.xlu1 %v2542_v4, %s2621_s15  ;;  %v616_v44 = vld [vmem:[#allocation2 + $0x48] sm:$0xff] }
 0x18d   : > { %692 = vrot.lane.b32.xlu0 %v622_v13, %s2622_s28 }
 0x18e   : > { %2553 = vrot.lane.b32.xlu1 %v2552_v12, %s2622_s28 }
 0x18f   : > { %v1189_v60 = vld [vmem:[#allocation3 + $0x21] ss:$4 sm:$0x7f]  ;;  %v1191_v61 = vld [vmem:[#allocation3 + $0x22] ss:$4 sm:$0x7f] }
 0x190   : > { %v1193_v6 = vld [vmem:[#allocation3 + $0x23] ss:$4 sm:$0x7f] }
 0x191   : > { %686 = vrot.lane.b32.xlu0 %v621_v17, %s2623_s18 }
 0x192   : > { %684 = vrot.lane.b32.xlu1 %v620_v18, %s2623_s18 }
 0x195   : > { %1195 = vrot.lane.b32.xlu0 %v1189_v60, %s2621_s15  ;;  %v617_v60 = vld [vmem:[#allocation2 + $0x50] sm:$0x1f] }
 0x196   : > { %678 = vrot.lane.b32.xlu1 %v619_v49, %s2621_s15 }
 0x199   : > { %1203 = vrot.lane.b32.xlu0 %v1193_v6, %s2622_s28 }
 0x19a   : > { %694 = vrot.lane.b32.xlu1 %v623_v56, %s2622_s28  ;;  %v1219_v56 = vld [vmem:[%s3613_s5 + $0x50] sm:$0xff] }
 0x19e   : > { %1199 = vrot.lane.b32.xlu1 %v1191_v61, %s2623_s18 }
 0x1f3   : > { %v2539_v7 = vpop.permute.xlu0 %2538 }
 0x1f4   : > { %v2529_v8 = vpop.permute.xlu1 %2528  ;;  %v2541_v10 = vunpack.i.h.bf16 %v2539_v7  ;;  %v2540_v11 = vunpack.i.l.bf16 %v2539_v7  ;;  %v1218_v7 = vld [vmem:[%s3613_s5 + $0x48] sm:$0xff] }
 0x1f5   : > { %v2531_v62 = vunpack.i.h.bf16 %v2529_v8  ;;  %v2530_v63 = vunpack.i.l.bf16 %v2529_v8 }
 0x1f7   : > { %v2549_v9 = vpop.permute.xlu0 %2548  ;;  %v705_v12 = vsel %vm450_vm1, %v608_v1, %v2530_v63  ;;  %v698_v13 = vsel %vm450_vm1, %v600_v2, %v2531_v62  ;;  %v1217_v62 = vld [vmem:[%s3613_s5 + $0x40] sm:$0xff] }
 0x1f8   : > { %v2534_v3 = vpop.permute.xlu1 %2533  ;;  %v2551_v33 = vunpack.i.h.bf16 %v2549_v9  ;;  %v2550_v34 = vunpack.i.l.bf16 %v2549_v9  ;;  %v1213_v9 = vld [vmem:[%s3613_s5 + $0x20] sm:$0xff] }
 0x1f9   : > { %v2536_v4 = vunpack.i.h.bf16 %v2534_v3  ;;  %v2535_v5 = vunpack.i.l.bf16 %v2534_v3  ;;  %v1216_v3 = vld [vmem:[%s3613_s5 + $0x38] sm:$0xff] }
 0x1fb   : > { %v707_v14 = vsel %vm510_vm3, %v705_v12, %v2535_v5  ;;  %v700_v15 = vsel %vm510_vm3, %v698_v13, %v2536_v4  ;;  %v677_v26 = vpop.permute.xlu0 %676  ;;  %v1215_v4 = vld [vmem:[%s3613_s5 + $0x30] sm:$0xff]  ;;  %v1214_v5 = vld [vmem:[%s3613_s5 + $0x28] sm:$0xff] }
 0x1fc   : > { %v2544_v16 = vpop.permute.xlu1 %2543  ;;  %v709_v17 = vsel %vm702_vm7, %v707_v14, %v2540_v11  ;;  %v703_v18 = vsel %vm702_vm7, %v700_v15, %v2541_v10  ;;  %v711_v49 = vsel %vm450_vm1, %v616_v44, %v677_v26  ;;  %v1187_v10 = vld [vmem:[#allocation3 + $0x20] ss:$4 sm:$0x7f] }
 0x1fd   : > { %v2546_v20 = vunpack.i.h.bf16 %v2544_v16  ;;  %v2545_v22 = vunpack.i.l.bf16 %v2544_v16  ;;  %843 = vmatprep.mubr.f32.mxu1 %v709_v17  ;;  %v1212_v11 = vld [vmem:[%s3613_s5 + $0x18] sm:$0xff]  ;;  %v1211_v15 = vld [vmem:[%s3613_s5 + $0x10] sm:$0xff]  ;;  %v1210_v16 = vld [vmem:[%s3613_s5 + $0x8] sm:$0xff] }
 0x1fe   : > { %844 = vmatmul.mubr.f32.vlgmr.msra.gmra.mxu1 %v703_v18 }
 0x1ff   : > { %v706_v28 = vsel %vm450_vm1, %v609_v23, %v2545_v22  ;;  %v699_v30 = vsel %vm450_vm1, %v601_v24, %v2546_v20  ;;  %2368 = vmatpush3.msra.mxu1 %v1224_v19  ;;  %v693_v51 = vpop.permute.xlu0 %692  ;;  %v1209_v19 = vld [vmem:[%s3613_s5] sm:$0xff]  ;;  %v771_v23 = vsub.s32 1, %v2784_v42 }
 0x200   : > { %v2554_v35 = vpop.permute.xlu1 %2553  ;;  %2369 = vmatprep.subr.mxu1 %v2620_v0  ;;  %v708_v40 = vsel %vm510_vm3, %v706_v28, %v2550_v34  ;;  %v701_v41 = vsel %vm510_vm3, %v699_v30, %v2551_v33 }
 0x201   : > { %v2556_v38 = vunpack.i.h.bf16 %v2554_v35  ;;  %v2555_v39 = vunpack.i.l.bf16 %v2554_v35  ;;  %2370 = vmatpush3.msra.mxu1 %v1223_v25  ;;  %v772_v26 = vrot.slane %v2914_v21, %v771_v23 }
 0x202   : > { %2371 = vmatprep.subr.mxu1 %v2620_v0 }
 0x203   : > { %v710_v46 = vsel %vm702_vm7, %v708_v40, %v2555_v39  ;;  %v704_v47 = vsel %vm702_vm7, %v701_v41, %v2556_v38  ;;  %2372 = vmatpush3.msra.mxu1 %v1222_v36  ;;  %v687_v8 = vpop.permute.xlu0 %686 }
 0x204   : > { %v685_v50 = vpop.permute.xlu1 %684  ;;  %848 = vmatprep.mubr.f32.mxu1 %v710_v46  ;;  %2373 = vmatprep.subr.mxu1 %v2620_v0 }
 0x205   : > { %v713_v52 = vsel %vm510_vm3, %v711_v49, %v685_v50  ;;  %849 = vmatmul.mubr.f32.gmra.mxu1 %v704_v47 }
 0x206   : > { %v715_v54 = vsel %vm702_vm7, %v713_v52, %v693_v51  ;;  %2374 = vmatpush3.msra.mxu1 %v1221_v48  ;;  %2399 = vmatprep.mubr.msk.f32.mxu1 %vm2624_vm8, %v2620_v0  ;;  %v1227_v52 = vsub.s32 3, %v2784_v42 }
 0x207   : > { %919 = vmatmul.mubr.f32.vlgmr.msra.gmra.mxu0 %v715_v54  ;;  %2375 = vmatprep.subr.mxu1 %v2620_v0  ;;  %v1196_v12 = vpop.permute.xlu0 %1195 }
 0x208   : > { %2200 = vmatprep.mubr.msk.f32.mxu0 %vm450_vm1, %v625_v55  ;;  %v679_v61 = vpop.permute.xlu1 %678  ;;  %2376 = vmatpush3.msra.mxu1 %v1220_v53  ;;  %v1206_v14 = vsel %vm450_vm1, %v1187_v10, %v1196_v12  ;;  %v1228_v54 = vrot.slane %v2914_v21, %v1227_v52  ;;  %v974_v12 = vld [vmem:[%s3612_s4 + $0x10] sm:$0xff] }
 0x209   : > { %v712_v6 = vsel %vm450_vm1, %v617_v60, %v679_v61  ;;  %2377 = vmatprep.subr.mxu1 %v2620_v0 }
 0x20a   : > { %2378 = vmatpush3.msra.mxu1 %v1219_v56  ;;  %v714_v1 = vsel %vm510_vm3, %v712_v6, %v687_v8 }
 0x20b   : > { %2379 = vmatprep.subr.mxu1 %v2620_v0  ;;  %v1204_v18 = vpop.permute.xlu0 %1203 }
 0x20c   : > { %v695_v63 = vpop.permute.xlu1 %694  ;;  %2380 = vmatpush3.msra.mxu1 %v1218_v7 }
 0x20d   : > { %v716_v2 = vsel %vm702_vm7, %v714_v1, %v695_v63  ;;  %2381 = vmatprep.subr.mxu1 %v2620_v0 }
 0x20e   : > { %924 = vmatmul.mubr.f32.gmra.mxu0 %v716_v2  ;;  %2382 = vmatpush3.msra.mxu1 %v1217_v62 }
 0x20f   : > { %2383 = vmatprep.subr.mxu1 %v2620_v0 }
 0x210   : > { %2384 = vmatpush3.msra.mxu1 %v1216_v3  ;;  %v1200_v13 = vpop.permute.xlu1 %1199 }
 0x211   : > { %2385 = vmatprep.subr.mxu1 %v2620_v0  ;;  %v1207_v17 = vsel %vm510_vm3, %v1206_v14, %v1200_v13  ;;  %v973_v13 = vld [vmem:[%s3612_s4 + $0x8] sm:$0xff]  ;;  %v972_v14 = vld [vmem:[%s3612_s4] sm:$0xff] }
 0x212   : > { %2386 = vmatpush3.msra.mxu1 %v1215_v4  ;;  %v1208_v20 = vsel %vm702_vm7, %v1207_v17, %v1204_v18 }
 0x213   : > { %2387 = vmatprep.subr.mxu1 %v2620_v0 }
 0x214   : > { %2388 = vmatpush3.msra.mxu1 %v1214_v5 }
 0x215   : > { %2389 = vmatprep.subr.mxu1 %v2620_v0 }
 0x216   : > { %2390 = vmatpush3.msra.mxu1 %v1213_v9 }
 0x217   : > { %2391 = vmatprep.subr.mxu1 %v2620_v0 }
 0x218   : > { %2392 = vmatpush3.msra.mxu1 %v1212_v11  ;;  %v975_v11 = vld [vmem:[%s3612_s4 + $0x18] sm:$0xff] }
 0x219   : > { %2393 = vmatprep.subr.mxu1 %v2620_v0  ;;  %2356 = vmatprep.subr.mxu0 %v975_v11 }
 0x21a   : > { %2394 = vmatpush3.msra.mxu1 %v1211_v15  ;;  %2357 = vmatpush3.msra.mxu0 %v975_v11  ;;  %v1355_v11 = vld [vmem:[%s3614_s6 + $0x98] sm:$0xff] }
 0x21b   : > { %2395 = vmatprep.subr.mxu1 %v2620_v0  ;;  %2358 = vmatprep.subr.mxu0 %v974_v12 }
 0x21c   : > { %2396 = vmatpush3.msra.mxu1 %v1210_v16  ;;  %2359 = vmatpush3.msra.mxu0 %v974_v12  ;;  %v1354_v12 = vld [vmem:[%s3614_s6 + $0x90] sm:$0xff] }
 0x21d   : > { %2397 = vmatprep.subr.mxu1 %v2620_v0  ;;  %2360 = vmatprep.subr.mxu0 %v973_v13 }
 0x21e   : > { %2398 = vmatpush3.msra.mxu1 %v1209_v19  ;;  %2361 = vmatpush3.msra.mxu0 %v973_v13  ;;  %v1353_v13 = vld [vmem:[%s3614_s6 + $0x88] sm:$0xff] }
 0x21f   : > { %2400 = vmatmul.mubr.f32.vlgmr.msra.gmra.mxu1 %v1208_v20  ;;  %2402 = vmatprep.subr.mxu1 %v2620_v0 }
 0x220   : > { %2410 = vmatprep.mubr.msk.f32.mxu1 %vm2624_vm8, %v2620_v0  ;;  %2362 = vmatprep.subr.mxu0 %v972_v14 }
 0x221   : > { %2363 = vmatpush3.msra.mxu0 %v972_v14 }
 0x222   : > { %1371 = vmatprep.subr.mxu0 %v2620_v0 }
 0x2be   : > { %v2259_v22 = vpop.f32.mrf.mxu1 }
 0x2c0   : > { %v2260_v24 = vpop.f32.mrf.mxu1 }
 0x2c1   : > { %v2261_v25 = vadd.f32 %v2260_v24, %v2259_v22  ;;  %v3150_v22 = vld [vmem:[%s3609_s1] sm:$0xff] }
 0x2c2   : > { %v3154_v24 = vrot.slane %v3150_v22, %v2787_v43 }
 0x2c3   : > { %v846_v30 = vadd.f32 %v2261_v25, %v772_v26 }
 0x2c5   : > { %v2262_v28 = vpop.f32.mrf.mxu1 }
 0x2c7   : > { %v2263_v33 = vpop.f32.mrf.mxu1  ;;  %v920_v34 = vpop.f32.mrf.mxu0 }
 0x2c8   : > { %v921_v35 = vadd.f32 %v920_v34, %v846_v30  ;;  %v2264_v36 = vadd.f32 %v2263_v33, %v2262_v28 }
 0x2c9   : > { %v922_v38 = vpop.f32.mrf.mxu0 }
 0x2ca   : > { %2561 = vtanh.f32 %v921_v35  ;;  %v851_v39 = vadd.f32 %v2264_v36, %v772_v26  ;;  %v3159_v26 = vrot.slane %v3150_v22, %v771_v23 }
 0x2ce   : > { %v925_v40 = vpop.f32.mrf.mxu0 }
 0x2cf   : > { %v926_v41 = vadd.f32 %v925_v40, %v851_v39 }
 0x2d0   : > { %v927_v44 = vpop.f32.mrf.mxu0 }
 0x2d1   : > { %2563 = vtanh.f32 %v926_v41  ;;  %v1351_v44 = vld [vmem:[%s3614_s6 + $0x78] sm:$0xff] }
 0x2d7   : > { %v2562_v46 = vpop.eup %2561 }
 0x2d8   : > { %v931_v47 = vadd.f32 %v2562_v46, %v2940_v37 }
 0x2da   : > { %v933_v48 = vsel %vm450_vm1, %v931_v47, 0.0 }
 0x2db   : > { %934 = vadd.xlane.f32.xlu1 %v933_v48  ;;  %v1349_v48 = vld [vmem:[%s3614_s6 + $0x68] sm:$0xff] }
 0x2de   : > { %v2564_v49 = vpop.eup %2563 }
 0x2df   : > { %v932_v50 = vadd.f32 %v2564_v49, %v2918_v27  ;;  %v1295_v53 = vpop.f32.mrf.mxu1  ;;  %v1348_v49 = vld [vmem:[%s3614_s6 + $0x60] sm:$0xff] }
 0x2e0   : > { %v1296_v56 = vadd.f32 %v1295_v53, %v1228_v54  ;;  %v1345_v53 = vld [vmem:[%s3614_s6 + $0x48] sm:$0xff]  ;;  %v1344_v54 = vld [vmem:[%s3614_s6 + $0x40] sm:$0xff] }
 0x2e1   : > { %v936_v51 = vsel %vm598_vm6, %v932_v50, 0.0  ;;  %v2401_v55 = vpop.f32.mrf.mxu1 }
 0x2e2   : > { %937 = vadd.xlane.f32.xlu0 %v936_v51  ;;  %2565 = vtanh.f32 %v1296_v56  ;;  %v1346_v51 = vld [vmem:[%s3614_s6 + $0x50] sm:$0xff]  ;;  %v1343_v55 = vld [vmem:[%s3614_s6 + $0x38] sm:$0xff] }
 0x2e3   : > { %v1342_v56 = vld [vmem:[%s3614_s6 + $0x30] sm:$0xff] }
 0x2ef   : > { %v3123_v37 = vpop.eup %2565 }
 0x2f0   : > { %1303 = vst.msk [vmem:[#allocation3 + $0x46] sm:$0x7f] %vm1302_vm10, %v3123_v37 }
 0x2f7   : > { %v1305_v3 = vld [vmem:[#allocation3 + $0x41] sm:$0x7f] }
 0x2f8   : > { %v1309_v4 = vld [vmem:[#allocation3 + $0x45] sm:$0x7f] }
 0x2f9   : > { %v1310_v5 = vld [vmem:[#allocation3 + $0x46] sm:$0x7f] }
 0x2fa   : > { %v1306_v9 = vld [vmem:[#allocation3 + $0x42] sm:$0x7f] }
 0x2fb   : > { %v1307_v10 = vld [vmem:[#allocation3 + $0x43] sm:$0x7f] }
 0x2fc   : > { %v1308_v39 = vld [vmem:[#allocation3 + $0x44] sm:$0x7f] }
 0x2fd   : > { %v1304_v14 = vld [vmem:[#allocation3 + $0x40] sm:$0x7f] }
 0x364   : > { %v935_v27 = vpop.xlane.xlu1 %934 }
 0x365   : > { %v940_v60 = vmul.f32 0.03125, %v935_v27  ;;  %v1341_v27 = vld [vmem:[%s3614_s6 + $0x28] sm:$0xff] }
 0x367   : > { %v942_v61 = vsub.f32 %v931_v47, %v940_v60  ;;  %v1350_v47 = vld [vmem:[%s3614_s6 + $0x70] sm:$0xff]  ;;  %v1340_v60 = vld [vmem:[%s3614_s6 + $0x20] sm:$0xff] }
 0x369   : > { %v944_v6 = vmul.f32 %v942_v61, %v942_v61 }
 0x36b   : > { %v938_v7 = vpop.xlane.xlu0 %937  ;;  %v946_v8 = vsel %vm450_vm1, %v944_v6, 0.0  ;;  %v1338_v6 = vld [vmem:[%s3614_s6 + $0x10] sm:$0xff] }
 0x36c   : > { %v941_v62 = vmul.f32 0.03125, %v938_v7  ;;  %947 = vadd.xlane.f32.xlu0 %v946_v8  ;;  %v1337_v7 = vld [vmem:[%s3614_s6 + $0x8] sm:$0xff]  ;;  %v1336_v8 = vld [vmem:[%s3614_s6] sm:$0xff] }
 0x36e   : > { %v943_v63 = vsub.f32 %v932_v50, %v941_v62  ;;  %v1347_v50 = vld [vmem:[%s3614_s6 + $0x58] sm:$0xff] }
 0x36f   : > { %v1363_v62 = vld [vmem:[%s3614_s6 + $0xd8] sm:$0xff] }
 0x370   : > { %v945_v1 = vmul.f32 %v943_v63, %v943_v63 }
 0x372   : > { %v949_v2 = vsel %vm598_vm6, %v945_v1, 0.0  ;;  %v1361_v1 = vld [vmem:[%s3614_s6 + $0xc8] sm:$0xff] }
 0x373   : > { %950 = vadd.xlane.f32.xlu1 %v949_v2  ;;  %v1360_v2 = vld [vmem:[%s3614_s6 + $0xc0] sm:$0xff] }
 0x382   : > { %1312 = vrot.lane.b32.xlu0 %v1305_v3, %s2621_s15  ;;  %v1359_v3 = vld [vmem:[%s3614_s6 + $0xb8] sm:$0xff] }
 0x384   : > { %1324 = vrot.lane.b32.xlu1 %v1309_v4, %s2621_s15  ;;  %v1358_v4 = vld [vmem:[%s3614_s6 + $0xb0] sm:$0xff] }
 0x386   : > { %1328 = vrot.lane.b32.xlu0 %v1310_v5, %s2623_s18  ;;  %v1357_v5 = vld [vmem:[%s3614_s6 + $0xa8] sm:$0xff] }
 0x388   : > { %1316 = vrot.lane.b32.xlu1 %v1306_v9, %s2623_s18  ;;  %v1356_v9 = vld [vmem:[%s3614_s6 + $0xa0] sm:$0xff] }
 0x38c   : > { %1320 = vrot.lane.b32.xlu1 %v1307_v10, %s2622_s28 }
 0x3f5   : > { %v948_v15 = vpop.xlane.xlu0 %947 }
 0x3f6   : > { %v952_v16 = vmul.f32 0.03125, %v948_v15 }
 0x3f8   : > { %v954_v17 = vadd.f32 1e-05, %v952_v16  ;;  %v1352_v16 = vld [vmem:[%s3614_s6 + $0x80] sm:$0xff] }
 0x3f9   : > { %v3163_v35 = vpop.permute.xlu0 %1312 }
 0x3fa   : > { %2567 = vrsqrt.f32 %v954_v17  ;;  %v1331_v17 = vsel %vm450_vm1, %v1304_v14, %v3163_v35 }
 0x3fc   : > { %v951_v18 = vpop.xlane.xlu1 %950 }
 0x3fd   : > { %v953_v19 = vmul.f32 0.03125, %v951_v18  ;;  %v1329_v41 = vpop.permute.xlu0 %1328 }
 0x3ff   : > { %v955_v20 = vadd.f32 1e-05, %v953_v19 }
 0x400   : > { %v1325_v38 = vpop.permute.xlu1 %1324 }
 0x401   : > { %2569 = vrsqrt.f32 %v955_v20  ;;  %v1334_v40 = vsel %vm450_vm1, %v1308_v39, %v1325_v38 }
 0x402   : > { %v1335_v46 = vsel %vm510_vm3, %v1334_v40, %v1329_v41 }
 0x404   : > { %v1317_v10 = vpop.permute.xlu1 %1316 }
 0x405   : > { %v1332_v18 = vsel %vm510_vm3, %v1331_v17, %v1317_v10 }
 0x407   : > { %v2568_v25 = vpop.eup %2567 }
 0x408   : > { %v958_v28 = vmul.f32 %v2568_v25, %v942_v61  ;;  %v1339_v61 = vld [vmem:[%s3614_s6 + $0x18] sm:$0xff]  ;;  %v1321_v15 = vpop.permute.xlu1 %1320 }
 0x409   : > { %v1333_v19 = vsel %vm702_vm7, %v1332_v18, %v1321_v15 }
 0x40a   : > { %v964_v30 = vmul.f32 %v3154_v24, %v958_v28  ;;  %v1366_v28 = vsub.s32 4, %v2784_v42 }
 0x40c   : > { %v970_v33 = vadd.f32 %v3159_v26, %v964_v30  ;;  %v1367_v30 = vrot.slane %v2914_v21, %v1366_v28 }
 0x40e   : > { %v2570_v34 = vpop.eup %2569  ;;  %2364 = vmatprep.mubr.msk.f32.mxu0 %vm450_vm1, %v970_v33 }
 0x40f   : > { %v959_v36 = vmul.f32 %v2570_v34, %v943_v63  ;;  %v1362_v63 = vld [vmem:[%s3614_s6 + $0xd0] sm:$0xff] }
 0x411   : > { %v965_v43 = vmul.f32 %v3154_v24, %v959_v36 }
 0x413   : > { %v971_v23 = vadd.f32 %v3159_v26, %v965_v43 }
 0x415   : > { %2365 = vmatmul.mubr.msk.f32.vlgmr.msra.gmra.mxu0 %vm450_vm1, %v971_v23 }
 0x416   : > { %1372 = vmatpush1.msra.mxu0 %v1351_v44  ;;  %2203 = vmatprep.mubr.msk.f32.mxu0 %vm702_vm7, %v1335_v46  ;;  %v1461_v46 = vld [vmem:[%s3615_s7 + $0x18] sm:$0xff] }
 0x417   : > { %1373 = vmatprep.subr.mxu0 %v2620_v0  ;;  %2403 = vmatpush3.msra.mxu1 %v1461_v46 }
 0x418   : > { %1374 = vmatpush1.msra.mxu0 %v1350_v47  ;;  %v1460_v47 = vld [vmem:[%s3615_s7 + $0x10] sm:$0xff]  ;;  %2404 = vmatprep.subr.mxu1 %v2620_v0 }
 0x419   : > { %1375 = vmatprep.subr.mxu0 %v2620_v0  ;;  %2405 = vmatpush3.msra.mxu1 %v1460_v47 }
 0x41a   : > { %1376 = vmatpush1.msra.mxu0 %v1349_v48  ;;  %2406 = vmatprep.subr.mxu1 %v2620_v0  ;;  %v1458_v48 = vld [vmem:[%s3615_s7] sm:$0xff] }
 0x41b   : > { %1377 = vmatprep.subr.mxu0 %v2620_v0 }
 0x41c   : > { %1378 = vmatpush1.msra.mxu0 %v1348_v49 }
 0x41d   : > { %1379 = vmatprep.subr.mxu0 %v2620_v0 }
 0x41e   : > { %1380 = vmatpush1.msra.mxu0 %v1347_v50 }
 0x41f   : > { %1381 = vmatprep.subr.mxu0 %v2620_v0 }
 0x420   : > { %1382 = vmatpush1.msra.mxu0 %v1346_v51 }
 0x421   : > { %1383 = vmatprep.subr.mxu0 %v2620_v0 }
 0x422   : > { %1384 = vmatpush1.msra.mxu0 %v1345_v53 }
 0x423   : > { %1385 = vmatprep.subr.mxu0 %v2620_v0 }
 0x424   : > { %1386 = vmatpush1.msra.mxu0 %v1344_v54 }
 0x425   : > { %1387 = vmatprep.subr.mxu0 %v2620_v0 }
 0x426   : > { %1388 = vmatpush1.msra.mxu0 %v1343_v55 }
 0x427   : > { %1389 = vmatprep.subr.mxu0 %v2620_v0 }
 0x428   : > { %1390 = vmatpush1.msra.mxu0 %v1342_v56 }
 0x429   : > { %1391 = vmatprep.subr.mxu0 %v2620_v0 }
 0x42a   : > { %1392 = vmatpush1.msra.mxu0 %v1341_v27 }
 0x42b   : > { %1393 = vmatprep.subr.mxu0 %v2620_v0 }
 0x42c   : > { %1394 = vmatpush1.msra.mxu0 %v1340_v60 }
 0x42d   : > { %1395 = vmatprep.subr.mxu0 %v2620_v0 }
 0x42e   : > { %1396 = vmatpush1.msra.mxu0 %v1339_v61 }
 0x42f   : > { %1397 = vmatprep.subr.mxu0 %v2620_v0 }
 0x430   : > { %1398 = vmatpush1.msra.mxu0 %v1338_v6 }
 0x431   : > { %1399 = vmatprep.subr.mxu0 %v2620_v0 }
 0x432   : > { %1400 = vmatpush1.msra.mxu0 %v1337_v7 }
 0x433   : > { %1401 = vmatprep.subr.mxu0 %v2620_v0 }
 0x434   : > { %1402 = vmatpush1.msra.mxu0 %v1336_v8 }
 0x435   : > { %1411 = vmatprep.subr.mxu0 %v2620_v0 }
 0x436   : > { %1412 = vmatpush2.msra.mxu0 %v1363_v62  ;;  %v1558_v62 = vsub.s32 5, %v2784_v42 }
 0x437   : > { %1413 = vmatprep.subr.mxu0 %v2620_v0 }
 0x438   : > { %1414 = vmatpush2.msra.mxu0 %v1362_v63  ;;  %v1078_v63 = vsub.s32 2, %v2784_v42 }
 0x439   : > { %1415 = vmatprep.subr.mxu0 %v2620_v0 }
 0x43a   : > { %1416 = vmatpush2.msra.mxu0 %v1361_v1 }
 0x43b   : > { %1417 = vmatprep.subr.mxu0 %v2620_v0 }
 0x43c   : > { %1418 = vmatpush2.msra.mxu0 %v1360_v2  ;;  %v1559_v2 = vrot.slane %v2914_v21, %v1558_v62 }
 0x43d   : > { %1419 = vmatprep.subr.mxu0 %v2620_v0 }
 0x43e   : > { %1420 = vmatpush2.msra.mxu0 %v1359_v3  ;;  %v1079_v3 = vrot.slane %v2914_v21, %v1078_v63 }
 0x43f   : > { %1421 = vmatprep.subr.mxu0 %v2620_v0 }
 0x440   : > { %1422 = vmatpush2.msra.mxu0 %v1358_v4 }
 0x441   : > { %1423 = vmatprep.subr.mxu0 %v2620_v0 }
 0x442   : > { %1424 = vmatpush2.msra.mxu0 %v1357_v5 }
 0x443   : > { %1425 = vmatprep.subr.mxu0 %v2620_v0 }
 0x444   : > { %1426 = vmatpush2.msra.mxu0 %v1356_v9 }
 0x445   : > { %1427 = vmatprep.subr.mxu0 %v2620_v0 }
 0x446   : > { %1428 = vmatpush2.msra.mxu0 %v1355_v11 }
 0x447   : > { %1429 = vmatprep.subr.mxu0 %v2620_v0 }
 0x448   : > { %1430 = vmatpush2.msra.mxu0 %v1354_v12 }
 0x449   : > { %1431 = vmatprep.subr.mxu0 %v2620_v0 }
 0x44a   : > { %1432 = vmatpush2.msra.mxu0 %v1353_v13 }
 0x44b   : > { %1433 = vmatprep.subr.mxu0 %v2620_v0 }
 0x44c   : > { %1434 = vmatpush2.msra.mxu0 %v1352_v16 }
 0x44d   : > { %1436 = vmatmul.mubr.f32.vlgmr.msra.gmra.mxu0 %v1333_v19  ;;  %2496 = vmatprep.subr.mxu0 %v2620_v0 }
 0x44e   : > { %2504 = vmatprep.mubr.msk.f32.mxu0 %vm2624_vm8, %v2620_v0 }
 0x4d5   : > { %v2366_v20 = vpop.f32.mrf.mxu0 }
 0x4d6   : > { %1060 = vst [vmem:[#allocation2 + $0x70] ss:$2 sm:$0x1f] %v2366_v20 }
 0x4d7   : > { %v1048_v25 = vpop.f32.mrf.mxu0 }
 0x4d8   : > { %1058 = vst [vmem:[#allocation2 + $0x60] ss:$2 sm:$0xff] %v1048_v25 }
 0x50d   : > { %v1437_v33 = vpop.f32.mrf.mxu0 }
 0x50e   : > { %v1438_v34 = vadd.f32 %v1437_v33, %v1367_v30 }
 0x50f   : > { %v1439_v35 = vpop.f32.mrf.mxu0 }
 0x510   : > { %2571 = vtanh.f32 %v1438_v34 }
 0x51d   : > { %v2572_v36 = vpop.eup %2571 }
 0x51e   : > { %v1442_v38 = vadd.f32 %v2572_v36, %v3123_v37  ;;  %v1459_v37 = vld [vmem:[%s3615_s7 + $0x8] sm:$0xff] }
 0x51f   : > { %2407 = vmatpush3.msra.mxu1 %v1459_v37 }
 0x520   : > { %v1443_v43 = vsel %vm1302_vm10, %v1442_v38, 0.0  ;;  %2408 = vmatprep.subr.mxu1 %v2620_v0 }
 0x521   : > { %1444 = vadd.xlane.f32.xlu0 %v1443_v43  ;;  %2409 = vmatpush3.msra.mxu1 %v1458_v48 }
 0x522   : > { %2413 = vmatprep.subr.mxu1 %v2620_v0 }
 0x5aa   : > { %v1445_v39 = vpop.xlane.xlu0 %1444 }
 0x5ab   : > { %v1446_v40 = vmul.f32 0.03125, %v1445_v39 }
 0x5ad   : > { %v1447_v41 = vsub.f32 %v1442_v38, %v1446_v40 }
 0x5af   : > { %v1448_v23 = vmul.f32 %v1447_v41, %v1447_v41 }
 0x5b1   : > { %v1449_v44 = vsel %vm1302_vm10, %v1448_v23, 0.0 }
 0x5b2   : > { %1450 = vadd.xlane.f32.xlu1 %v1449_v44 }
 0x63b   : > { %v1451_v49 = vpop.xlane.xlu1 %1450 }
 0x63c   : > { %v1452_v50 = vmul.f32 0.03125, %v1451_v49 }
 0x63e   : > { %v1453_v51 = vadd.f32 1e-05, %v1452_v50 }
 0x640   : > { %2573 = vrsqrt.f32 %v1453_v51 }
 0x64d   : > { %v2574_v53 = vpop.eup %2573 }
 0x64e   : > { %v1455_v54 = vmul.f32 %v2574_v53, %v1447_v41 }
 0x650   : > { %v1456_v55 = vmul.f32 %v1455_v54, %v3154_v24 }
 0x652   : > { %v1457_v56 = vadd.f32 %v1456_v55, %v3159_v26 }
 0x654   : > { %2411 = vmatmul.mubr.msk.f32.vlgmr.msra.gmra.mxu1 %vm450_vm1, %v1457_v56 }
 0x655   : > { %2429 = vmatprep.mubr.msk.f32.mxu1 %vm2624_vm8, %v2620_v0 }
 0x714   : > { %v1531_v27 = vpop.f32.mrf.mxu1 }
 0x715   : > { %1536 = vst [vmem:[#allocation3 + $0x50] ss:$4 sm:$0x7f] %v1531_v27  ;;  %1543 = vrot.lane.b32.xlu1 %v1531_v27, %s2623_s18  ;;  %1538 = vrot.lane.b32.xlu0 %v1531_v27, %s2622_s28  ;;  %s440_s18 = scalar_lea.vmem %s3621_s13, %s2513_s16 }
 0x716   : > { %v2412_v60 = vpop.f32.mrf.mxu1 }
 0x719   : > { %1063 = vrot.lane.b32.xlu1 %v1048_v25, %s2622_s28  ;;  %1548 = vrot.lane.b32.xlu0 %v1531_v27, %s2621_s15 }
 0x71d   : > { %1065 = vrot.lane.b32.xlu0 %v2366_v20, %s2622_s28 }
 0x787   : > { %v1544_v61 = vpop.permute.xlu1 %1543  ;;  %v1539_v6 = vpop.permute.xlu0 %1538 }
 0x788   : > { %1547 = vst [vmem:[#allocation3 + $0x52] ss:$4 sm:$0x7f] %v1544_v61  ;;  %1542 = vst [vmem:[#allocation3 + $0x51] ss:$4 sm:$0x7f] %v1539_v6 }
 0x78b   : > { %v1064_v7 = vpop.permute.xlu1 %1063  ;;  %v1549_v8 = vpop.permute.xlu0 %1548 }
 0x78c   : > { %1070 = vst [vmem:[#allocation2 + $0x61] ss:$2 sm:$0xff] %v1064_v7  ;;  %1552 = vst [vmem:[#allocation3 + $0x53] ss:$4 sm:$0x7f] %v1549_v8 }
 0x78f   : > { %v1066_v1 = vpop.permute.xlu0 %1065 }
 0x790   : > { %1072 = vst [vmem:[#allocation2 + $0x71] ss:$2 sm:$0x1f] %v1066_v1 }
 0x793   : > { %v1554_v4 = vld [vmem:[#allocation3 + $0x58] sm:$0xff]  ;;  %v1553_v5 = vld [vmem:[#allocation3 + $0x50] sm:$0xff]  ;;  %v1555_v9 = vld [vmem:[#allocation3 + $0x60] sm:$0xff] }
 0x794   : > { %v1561_v10 = vadd.f32 %v1559_v2, %v1554_v4  ;;  %v1560_v11 = vadd.f32 %v1559_v2, %v1553_v5  ;;  %v1562_v12 = vadd.f32 %v1559_v2, %v1555_v9  ;;  %v1073_v13 = vld [vmem:[#allocation2 + $0x60] sm:$0xff]  ;;  %v1074_v14 = vld [vmem:[#allocation2 + $0x68] sm:$0xff] }
 0x795   : > { %v1080_v15 = vadd.f32 %v1079_v3, %v1073_v13  ;;  %v1081_v16 = vadd.f32 %v1079_v3, %v1074_v14  ;;  %v1636_v13 = vld [vmem:[%s3616_s8 + $0x38] sm:$0xff]  ;;  %v1635_v14 = vld [vmem:[%s3616_s8 + $0x30] sm:$0xff] }
 0x796   : > { %2575 = vtanh.f32 %v1561_v10  ;;  %2414 = vmatpush3.msra.mxu1 %v1636_v13 }
 0x797   : > { %2577 = vtanh.f32 %v1560_v11  ;;  %v1075_v17 = vld [vmem:[#allocation2 + $0x70] sm:$0xff]  ;;  %2415 = vmatprep.subr.mxu1 %v2620_v0 }
 0x798   : > { %2579 = vtanh.f32 %v1562_v12  ;;  %v1082_v18 = vadd.f32 %v1079_v3, %v1075_v17  ;;  %2416 = vmatpush3.msra.mxu1 %v1635_v14  ;;  %v1632_v17 = vld [vmem:[%s3616_s8 + $0x18] sm:$0xff] }
 0x799   : > { %2581 = vtanh.f32 %v1080_v15  ;;  %v1634_v15 = vld [vmem:[%s3616_s8 + $0x28] sm:$0xff]  ;;  %2417 = vmatprep.subr.mxu1 %v2620_v0 }
 0x79a   : > { %2583 = vtanh.f32 %v1081_v16  ;;  %v1633_v16 = vld [vmem:[%s3616_s8 + $0x20] sm:$0xff]  ;;  %2418 = vmatpush3.msra.mxu1 %v1634_v15 }
 0x79b   : > { %2585 = vtanh.f32 %v1082_v18  ;;  %2419 = vmatprep.subr.mxu1 %v2620_v0  ;;  %v1631_v18 = vld [vmem:[%s3616_s8 + $0x10] sm:$0xff] }
 0x79c   : > { %2420 = vmatpush3.msra.mxu1 %v1633_v16 }
 0x79d   : > { %2421 = vmatprep.subr.mxu1 %v2620_v0 }
 0x79e   : > { %2422 = vmatpush3.msra.mxu1 %v1632_v17 }
 0x79f   : > { %2423 = vmatprep.subr.mxu1 %v2620_v0 }
 0x7a0   : > { %2424 = vmatpush3.msra.mxu1 %v1631_v18 }
 0x7a1   : > { %2425 = vmatprep.subr.mxu1 %v2620_v0 }
 0x7a3   : > { %v2576_v19 = vpop.eup %2575 }
 0x7a4   : > { %v2578_v21 = vpop.eup %2577  ;;  %v1567_v20 = vadd.f32 %v2576_v19, %v3006_v58  ;;  %v1630_v19 = vld [vmem:[%s3616_s8 + $0x8] sm:$0xff] }
 0x7a5   : > { %v2580_v25 = vpop.eup %2579  ;;  %v1566_v30 = vadd.f32 %v2578_v21, %v3003_v57  ;;  %2426 = vmatpush3.msra.mxu1 %v1630_v19 }
 0x7a6   : > { %v2582_v33 = vpop.eup %2581  ;;  %v1572_v34 = vsel %vm450_vm1, %v1567_v20, 0.0  ;;  %v1568_v35 = vadd.f32 %v2580_v25, %v3009_v59  ;;  %2427 = vmatprep.subr.mxu1 %v2620_v0 }
 0x7a7   : > { %v2584_v36 = vpop.eup %2583  ;;  %1573 = vadd.xlane.f32.xlu0 %v1572_v34  ;;  %v1569_v38 = vsel %vm450_vm1, %v1566_v30, 0.0  ;;  %v1086_v43 = vadd.f32 %v2582_v33, %v2763_v29 }
 0x7a8   : > { %v2586_v39 = vpop.eup %2585  ;;  %1570 = vadd.xlane.f32.xlu1 %v1569_v38  ;;  %v1575_v40 = vsel %vm450_vm1, %v1568_v35, 0.0  ;;  %v1087_v58 = vadd.f32 %v2584_v36, %v2766_v31 }
 0x7a9   : > { %v1089_v57 = vsel %vm450_vm1, %v1086_v43, 0.0  ;;  %v1088_v41 = vadd.f32 %v2586_v39, %v2771_v32 }
 0x7aa   : > { %v1092_v59 = vsel %vm450_vm1, %v1087_v58, 0.0 }
 0x7ab   : > { %1576 = vadd.xlane.f32.xlu0 %v1575_v40  ;;  %v1095_v23 = vsel %vm450_vm1, %v1088_v41, 0.0 }
 0x7ac   : > { %1090 = vadd.xlane.f32.xlu1 %v1089_v57 }
 0x7af   : > { %1093 = vadd.xlane.f32.xlu0 %v1092_v59 }
 0x7b0   : > { %1096 = vadd.xlane.f32.xlu1 %v1095_v23 }
 0x830   : > { %v1574_v44 = vpop.xlane.xlu0 %1573 }
 0x831   : > { %v1579_v29 = vmul.f32 0.03125, %v1574_v44  ;;  %v1571_v46 = vpop.xlane.xlu1 %1570 }
 0x832   : > { %v1578_v47 = vmul.f32 0.03125, %v1571_v46 }
 0x833   : > { %v3343_v37 = vsub.f32 %v1567_v20, %v1579_v29 }
 0x834   : > { %v3345_v48 = vsub.f32 %v1566_v30, %v1578_v47  ;;  %v1577_v31 = vpop.xlane.xlu0 %1576 }
 0x835   : > { %v1580_v49 = vmul.f32 0.03125, %v1577_v31  ;;  %v1091_v50 = vpop.xlane.xlu1 %1090  ;;  %v1585_v32 = vmul.f32 %v3343_v37, %v3343_v37 }
 0x836   : > { %v1098_v51 = vmul.f32 0.03125, %v1091_v50  ;;  %v1584_v53 = vmul.f32 %v3345_v48, %v3345_v48 }
 0x837   : > { %v3351_v54 = vsub.f32 %v1568_v35, %v1580_v49  ;;  %v1590_v55 = vsel %vm450_vm1, %v1585_v32, 0.0 }
 0x838   : > { %v3354_v56 = vsub.f32 %v1086_v43, %v1098_v51  ;;  %v1094_v27 = vpop.xlane.xlu0 %1093  ;;  %1591 = vadd.xlane.f32.xlu1 %v1590_v55  ;;  %v1587_v60 = vsel %vm450_vm1, %v1584_v53, 0.0  ;;  %v1629_v43 = vld [vmem:[%s3616_s8] sm:$0xff] }
 0x839   : > { %v1099_v61 = vmul.f32 0.03125, %v1094_v27  ;;  %1588 = vadd.xlane.f32.xlu0 %v1587_v60  ;;  %v1097_v6 = vpop.xlane.xlu1 %1096  ;;  %v1586_v7 = vmul.f32 %v3351_v54, %v3351_v54  ;;  %2428 = vmatpush3.msra.mxu1 %v1629_v43 }
 0x83a   : > { %v1100_v8 = vmul.f32 0.03125, %v1097_v6  ;;  %v1104_v1 = vmul.f32 %v3354_v56, %v3354_v56  ;;  %2438 = vmatprep.subr.mxu1 %v2620_v0 }
 0x83b   : > { %v3361_v2 = vsub.f32 %v1087_v58, %v1099_v61  ;;  %v1593_v3 = vsel %vm450_vm1, %v1586_v7, 0.0 }
 0x83c   : > { %v3364_v4 = vsub.f32 %v1088_v41, %v1100_v8  ;;  %v1107_v5 = vsel %vm450_vm1, %v1104_v1, 0.0 }
 0x83d   : > { %1594 = vadd.xlane.f32.xlu0 %v1593_v3  ;;  %1108 = vadd.xlane.f32.xlu1 %v1107_v5  ;;  %v1105_v9 = vmul.f32 %v3361_v2, %v3361_v2 }
 0x83e   : > { %v1106_v10 = vmul.f32 %v3364_v4, %v3364_v4 }
 0x83f   : > { %v1110_v11 = vsel %vm450_vm1, %v1105_v9, 0.0 }
 0x840   : > { %v1113_v12 = vsel %vm450_vm1, %v1106_v10, 0.0 }
 0x841   : > { %1111 = vadd.xlane.f32.xlu0 %v1110_v11  ;;  %1114 = vadd.xlane.f32.xlu1 %v1113_v12 }
 0x8c1   : > { %v1592_v21 = vpop.xlane.xlu1 %1591 }
 0x8c2   : > { %v1589_v20 = vpop.xlane.xlu0 %1588  ;;  %v1597_v25 = vmul.f32 0.03125, %v1592_v21 }
 0x8c3   : > { %v1596_v30 = vmul.f32 0.03125, %v1589_v20 }
 0x8c4   : > { %v1600_v33 = vadd.f32 1e-05, %v1597_v25 }
 0x8c5   : > { %v1599_v34 = vadd.f32 1e-05, %v1596_v30 }
 0x8c6   : > { %2587 = vrsqrt.f32 %v1600_v33  ;;  %v1595_v35 = vpop.xlane.xlu0 %1594 }
 0x8c7   : > { %2589 = vrsqrt.f32 %v1599_v34  ;;  %v1598_v36 = vmul.f32 0.03125, %v1595_v35 }
 0x8c9   : > { %v1601_v38 = vadd.f32 1e-05, %v1598_v36 }
 0x8ca   : > { %v1112_v49 = vpop.xlane.xlu0 %1111 }
 0x8cb   : > { %2591 = vrsqrt.f32 %v1601_v38  ;;  %v1117_v32 = vmul.f32 0.03125, %v1112_v49  ;;  %v1784_v49 = vld [vmem:[%s3617_s9 + $0x8] sm:$0xff] }
 0x8cd   : > { %v1120_v53 = vadd.f32 1e-05, %v1117_v32 }
 0x8d3   : > { %v2588_v39 = vpop.eup %2587 }
 0x8d4   : > { %v2590_v40 = vpop.eup %2589  ;;  %v1606_v58 = vmul.f32 %v2588_v39, %v3343_v37 }
 0x8d5   : > { %v1605_v57 = vmul.f32 %v2590_v40, %v3345_v48  ;;  %v1109_v48 = vpop.xlane.xlu1 %1108 }
 0x8d6   : > { %v1609_v41 = vmul.f32 %v1606_v58, %v3154_v24  ;;  %v1116_v31 = vmul.f32 0.03125, %v1109_v48  ;;  %v1786_v48 = vld [vmem:[%s3617_s9 + $0x18] sm:$0xff] }
 0x8d7   : > { %v1608_v59 = vmul.f32 %v1605_v57, %v3154_v24 }
 0x8d8   : > { %v2592_v23 = vpop.eup %2591  ;;  %v1612_v44 = vadd.f32 %v1609_v41, %v3159_v26  ;;  %v1119_v50 = vadd.f32 1e-05, %v1116_v31  ;;  %v1785_v31 = vld [vmem:[%s3617_s9 + $0x10] sm:$0xff] }
 0x8d9   : > { %v1611_v29 = vadd.f32 %v1608_v59, %v3159_v26  ;;  %v1607_v46 = vmul.f32 %v2592_v23, %v3351_v54  ;;  %v1115_v51 = vpop.xlane.xlu1 %1114 }
 0x8da   : > { %1619 = vrot.lane.b32.xlu1 %v1612_v44, %s2621_s15  ;;  %2593 = vrsqrt.f32 %v1119_v50  ;;  %v1118_v55 = vmul.f32 0.03125, %v1115_v51  ;;  %v1783_v50 = vld [vmem:[%s3617_s9] sm:$0xff] }
 0x8db   : > { %1617 = vrot.lane.b32.xlu0 %v1611_v29, %s2621_s15  ;;  %v1610_v47 = vmul.f32 %v1607_v46, %v3154_v24  ;;  %2595 = vrsqrt.f32 %v1120_v53 }
 0x8dc   : > { %v1121_v54 = vadd.f32 1e-05, %v1118_v55 }
 0x8dd   : > { %v1613_v37 = vadd.f32 %v1610_v47, %v3159_v26 }
 0x8de   : > { %2597 = vrsqrt.f32 %v1121_v54 }
 0x8df   : > { %1621 = vrot.lane.b32.xlu1 %v1613_v37, %s2621_s15 }
 0x8e7   : > { %v2594_v27 = vpop.eup %2593 }
 0x8e8   : > { %v1125_v60 = vmul.f32 %v2594_v27, %v3354_v56  ;;  %v2596_v61 = vpop.eup %2595 }
 0x8e9   : > { %v1126_v7 = vmul.f32 %v2596_v61, %v3361_v2 }
 0x8ea   : > { %v1128_v6 = vmul.f32 %v1125_v60, %v3154_v24 }
 0x8eb   : > { %v2598_v8 = vpop.eup %2597  ;;  %v1129_v3 = vmul.f32 %v1126_v7, %v3154_v24  ;;  %v1772_v7 = vrot.slane %v3150_v22, %v1078_v63  ;;  %v1890_v63 = vld [vmem:[%s3618_s10 + $0x70] sm:$0xff] }
 0x8ec   : > { %v1131_v1 = vadd.f32 %v1128_v6, %v3159_v26  ;;  %v1127_v5 = vmul.f32 %v2598_v8, %v3364_v4 }
 0x8ed   : > { %v1132_v56 = vadd.f32 %v1129_v3, %v3159_v26 }
 0x8ee   : > { %v1130_v12 = vmul.f32 %v1127_v5, %v3154_v24  ;;  %v1639_v24 = vsub.s32 6, %v2784_v42 }
 0x8f0   : > { %v1133_v4 = vadd.f32 %v1130_v12, %v3159_v26  ;;  %v1640_v15 = vrot.slane %v3150_v22, %v1639_v24  ;;  %v1888_v24 = vld [vmem:[%s3618_s10 + $0x60] sm:$0xff] }
 0x94c   : > { %v1620_v10 = vpop.permute.xlu1 %1619 }
 0x94d   : > { %v1618_v9 = vpop.permute.xlu0 %1617  ;;  %v1627_v2 = vsel %vm450_vm1, %v1132_v56, %v1620_v10  ;;  %v1891_v56 = vld [vmem:[%s3618_s10 + $0x78] sm:$0xff] }
 0x94e   : > { %v1626_v11 = vsel %vm450_vm1, %v1131_v1, %v1618_v9  ;;  %v1779_v1 = vrot.slane %v3150_v22, %v1227_v52 }
 0x94f   : > { %2430 = vmatmul.mubr.msk.f32.vlgmr.msra.gmra.mxu1 %vm510_vm3, %v1626_v11 }
 0x950   : > { %2432 = vmatprep.mubr.msk.f32.mxu1 %vm2624_vm8, %v2620_v0  ;;  %2439 = vmatpush3.msra.mxu1 %v1786_v48 }
 0x951   : > { %v1622_v13 = vpop.permute.xlu1 %1621  ;;  %2440 = vmatprep.subr.mxu1 %v2620_v0 }
 0x952   : > { %v1628_v14 = vsel %vm450_vm1, %v1133_v4, %v1622_v13  ;;  %2441 = vmatpush3.msra.mxu1 %v1785_v31  ;;  %v1889_v4 = vld [vmem:[%s3618_s10 + $0x68] sm:$0xff] }
 0x953   : > { %2433 = vmatmul.mubr.msk.f32.gmra.mxu1 %vm510_vm3, %v1627_v2  ;;  %2442 = vmatprep.subr.mxu1 %v2620_v0 }
 0x954   : > { %2435 = vmatprep.mubr.msk.f32.mxu1 %vm2624_vm8, %v2620_v0  ;;  %2443 = vmatpush3.msra.mxu1 %v1784_v49 }
 0x955   : > { %2444 = vmatprep.subr.mxu1 %v2620_v0 }
 0x956   : > { %2445 = vmatpush3.msra.mxu1 %v1783_v50 }
 0x957   : > { %2436 = vmatmul.mubr.msk.f32.gmra.mxu1 %vm510_vm3, %v1628_v14  ;;  %2455 = vmatprep.subr.mxu1 %v2620_v0 }
 0x958   : > { %2446 = vmatprep.mubr.msk.f32.mxu1 %vm2624_vm8, %v2620_v0 }
 0xa0f   : > { %v1716_v16 = vpop.f32.mrf.mxu1 }
 0xa10   : > { %v3440_v17 = vadd.f32 %v1716_v16, %v1640_v15  ;;  %v1887_v16 = vld [vmem:[%s3618_s10 + $0x58] sm:$0xff] }
 0xa11   : > { %v2431_v18 = vpop.f32.mrf.mxu1 }
 0xa12   : > { %v1730_v26 = vsel %vm450_vm1, %v3440_v17, 0.0  ;;  %v1886_v18 = vld [vmem:[%s3618_s10 + $0x50] sm:$0xff] }
 0xa13   : > { %1731 = vadd.xlane.f32.xlu0 %v1730_v26  ;;  %v1721_v19 = vpop.f32.mrf.mxu1  ;;  %v1885_v26 = vld [vmem:[%s3618_s10 + $0x48] sm:$0xff] }
 0xa14   : > { %v3444_v21 = vadd.f32 %v1721_v19, %v1640_v15  ;;  %v1884_v19 = vld [vmem:[%s3618_s10 + $0x40] sm:$0xff] }
 0xa15   : > { %v2434_v20 = vpop.f32.mrf.mxu1 }
 0xa16   : > { %v1733_v25 = vsel %vm450_vm1, %v3444_v21, 0.0  ;;  %v1883_v20 = vld [vmem:[%s3618_s10 + $0x38] sm:$0xff] }
 0xa17   : > { %1734 = vadd.xlane.f32.xlu1 %v1733_v25  ;;  %v1726_v30 = vpop.f32.mrf.mxu1  ;;  %v1882_v25 = vld [vmem:[%s3618_s10 + $0x30] sm:$0xff] }
 0xa18   : > { %v3448_v33 = vadd.f32 %v1726_v30, %v1640_v15  ;;  %v1881_v30 = vld [vmem:[%s3618_s10 + $0x28] sm:$0xff] }
 0xa19   : > { %v2437_v34 = vpop.f32.mrf.mxu1 }
 0xa1a   : > { %v1736_v35 = vsel %vm450_vm1, %v3448_v33, 0.0  ;;  %v1880_v34 = vld [vmem:[%s3618_s10 + $0x20] sm:$0xff] }
 0xa1b   : > { %1737 = vadd.xlane.f32.xlu0 %v1736_v35  ;;  %v1879_v35 = vld [vmem:[%s3618_s10 + $0x18] sm:$0xff] }
 0xa9c   : > { %v1732_v36 = vpop.xlane.xlu0 %1731 }
 0xa9d   : > { %v1739_v38 = vmul.f32 0.03125, %v1732_v36  ;;  %v1878_v36 = vld [vmem:[%s3618_s10 + $0x10] sm:$0xff] }
 0xa9f   : > { %v1742_v43 = vsub.f32 %v3440_v17, %v1739_v38  ;;  %v1877_v38 = vld [vmem:[%s3618_s10 + $0x8] sm:$0xff] }
 0xaa0   : > { %v1735_v39 = vpop.xlane.xlu1 %1734 }
 0xaa1   : > { %v1740_v40 = vmul.f32 0.03125, %v1735_v39  ;;  %v1745_v58 = vmul.f32 %v1742_v43, %v1742_v43 }
 0xaa3   : > { %v1743_v57 = vsub.f32 %v3444_v21, %v1740_v40  ;;  %v1748_v41 = vsel %vm450_vm1, %v1745_v58, 0.0 }
 0xaa4   : > { %1749 = vadd.xlane.f32.xlu0 %v1748_v41  ;;  %v1738_v59 = vpop.xlane.xlu0 %1737 }
 0xaa5   : > { %v1741_v23 = vmul.f32 0.03125, %v1738_v59  ;;  %v1746_v44 = vmul.f32 %v1743_v57, %v1743_v57 }
 0xaa7   : > { %v1744_v29 = vsub.f32 %v3448_v33, %v1741_v23  ;;  %v1751_v46 = vsel %vm450_vm1, %v1746_v44, 0.0  ;;  %v1895_v23 = vrot.slane %v3150_v22, %v1142_v45 }
 0xaa8   : > { %1752 = vadd.xlane.f32.xlu1 %v1751_v46 }
 0xaa9   : > { %v1747_v47 = vmul.f32 %v1744_v29, %v1744_v29 }
 0xaab   : > { %v1754_v37 = vsel %vm450_vm1, %v1747_v47, 0.0 }
 0xaac   : > { %1755 = vadd.xlane.f32.xlu0 %v1754_v37 }
 0xb2d   : > { %v1750_v32 = vpop.xlane.xlu0 %1749 }
 0xb2e   : > { %v1757_v51 = vmul.f32 0.03125, %v1750_v32 }
 0xb30   : > { %v1760_v53 = vadd.f32 1e-05, %v1757_v51 }
 0xb31   : > { %v1753_v55 = vpop.xlane.xlu1 %1752 }
 0xb32   : > { %2599 = vrsqrt.f32 %v1760_v53  ;;  %v1758_v54 = vmul.f32 0.03125, %v1753_v55 }
 0xb34   : > { %v1761_v27 = vadd.f32 1e-05, %v1758_v54 }
 0xb35   : > { %v1756_v60 = vpop.xlane.xlu0 %1755 }
 0xb36   : > { %2601 = vrsqrt.f32 %v1761_v27  ;;  %v1759_v61 = vmul.f32 0.03125, %v1756_v60 }
 0xb38   : > { %v1762_v6 = vadd.f32 1e-05, %v1759_v61 }
 0xb3a   : > { %2603 = vrsqrt.f32 %v1762_v6 }
 0xb3f   : > { %v2600_v8 = vpop.eup %2599 }
 0xb40   : > { %v1766_v3 = vmul.f32 %v2600_v8, %v1742_v43  ;;  %v1876_v43 = vld [vmem:[%s3618_s10] sm:$0xff] }
 0xb42   : > { %v1773_v5 = vmul.f32 %v1772_v7, %v1766_v3 }
 0xb43   : > { %v2602_v9 = vpop.eup %2601 }
 0xb44   : > { %v1780_v10 = vadd.f32 %v1779_v1, %v1773_v5  ;;  %v1767_v11 = vmul.f32 %v2602_v9, %v1743_v57 }
 0xb46   : > { %2447 = vmatmul.mubr.msk.f32.vlgmr.msra.gmra.mxu1 %vm450_vm1, %v1780_v10  ;;  %v1774_v12 = vmul.f32 %v1772_v7, %v1767_v11  ;;  %v2035_v11 = vld [vmem:[%s3619_s11 + $0x18] sm:$0xff] }
 0xb47   : > { %v2604_v2 = vpop.eup %2603  ;;  %2449 = vmatprep.mubr.msk.f32.mxu1 %vm2624_vm8, %v2620_v0  ;;  %2456 = vmatpush3.msra.mxu1 %v1891_v56  ;;  %v2034_v56 = vld [vmem:[%s3619_s11 + $0x10] sm:$0xff] }
 0xb48   : > { %v1781_v52 = vadd.f32 %v1779_v1, %v1774_v12  ;;  %v1768_v13 = vmul.f32 %v2604_v2, %v1744_v29  ;;  %2457 = vmatprep.subr.mxu1 %v2620_v0  ;;  %2497 = vmatpush3.msra.mxu0 %v2035_v11  ;;  %v2033_v12 = vld [vmem:[%s3619_s11 + $0x8] sm:$0xff] }
 0xb49   : > { %2458 = vmatpush3.msra.mxu1 %v1890_v63  ;;  %2498 = vmatprep.subr.mxu0 %v2620_v0  ;;  %v2032_v63 = vld [vmem:[%s3619_s11] sm:$0xff] }
 0xb4a   : > { %2450 = vmatmul.mubr.msk.f32.gmra.mxu1 %vm450_vm1, %v1781_v52  ;;  %v1775_v14 = vmul.f32 %v1772_v7, %v1768_v13  ;;  %2459 = vmatprep.subr.mxu1 %v2620_v0 }
 0xb4b   : > { %2452 = vmatprep.mubr.msk.f32.mxu1 %vm2624_vm8, %v2620_v0  ;;  %2460 = vmatpush3.msra.mxu1 %v1889_v4 }
 0xb4c   : > { %v1782_v15 = vadd.f32 %v1779_v1, %v1775_v14  ;;  %2461 = vmatprep.subr.mxu1 %v2620_v0  ;;  %2499 = vmatpush3.msra.mxu0 %v2034_v56 }
 0xb4d   : > { %2462 = vmatpush3.msra.mxu1 %v1888_v24  ;;  %2500 = vmatprep.subr.mxu0 %v2620_v0 }
 0xb4e   : > { %2453 = vmatmul.mubr.msk.f32.gmra.mxu1 %vm450_vm1, %v1782_v15  ;;  %2463 = vmatprep.subr.mxu1 %v2620_v0 }
 0xb4f   : > { %2464 = vmatpush3.msra.mxu1 %v1887_v16  ;;  %2487 = vmatprep.mubr.msk.f32.mxu1 %vm2624_vm8, %v2620_v0 }
 0xb50   : > { %2465 = vmatprep.subr.mxu1 %v2620_v0  ;;  %2501 = vmatpush3.msra.mxu0 %v2033_v12 }
 0xb51   : > { %2466 = vmatpush3.msra.mxu1 %v1886_v18  ;;  %2502 = vmatprep.subr.mxu0 %v2620_v0 }
 0xb52   : > { %2467 = vmatprep.subr.mxu1 %v2620_v0  ;;  %2503 = vmatpush3.msra.mxu0 %v2032_v63 }
 0xb53   : > { %2468 = vmatpush3.msra.mxu1 %v1885_v26  ;;  %v2611_v26 = vld [vmem:[%s3609_s1] sm:$0xff] }
 0xb54   : > { %2469 = vmatprep.subr.mxu1 %v2620_v0 }
 0xb55   : > { %2470 = vmatpush3.msra.mxu1 %v1884_v19  ;;  %v2021_v19 = vrot.slane %v2611_v26, %v1366_v28 }
 0xb56   : > { %2471 = vmatprep.subr.mxu1 %v2620_v0 }
 0xb57   : > { %2472 = vmatpush3.msra.mxu1 %v1883_v20 }
 0xb58   : > { %2473 = vmatprep.subr.mxu1 %v2620_v0 }
 0xb59   : > { %2474 = vmatpush3.msra.mxu1 %v1882_v25 }
 0xb5a   : > { %2475 = vmatprep.subr.mxu1 %v2620_v0 }
 0xb5b   : > { %2476 = vmatpush3.msra.mxu1 %v1881_v30  ;;  %v2028_v30 = vrot.slane %v2611_v26, %v1558_v62  ;;  %v2211_v62 = vld [vmem:[%s3620_s12] ss:$0 sm:$0xff] }
 0xb5c   : > { %2477 = vmatprep.subr.mxu1 %v2620_v0 }
 0xb5d   : > { %2478 = vmatpush3.msra.mxu1 %v1880_v34 }
 0xb5e   : > { %2479 = vmatprep.subr.mxu1 %v2620_v0 }
 0xb5f   : > { %2480 = vmatpush3.msra.mxu1 %v1879_v35 }
 0xb60   : > { %2481 = vmatprep.subr.mxu1 %v2620_v0 }
 0xb61   : > { %2482 = vmatpush3.msra.mxu1 %v1878_v36 }
 0xb62   : > { %2483 = vmatprep.subr.mxu1 %v2620_v0 }
 0xb63   : > { %2484 = vmatpush3.msra.mxu1 %v1877_v38 }
 0xb64   : > { %2485 = vmatprep.subr.mxu1 %v2620_v0 }
 0xb65   : > { %2486 = vmatpush3.msra.mxu1 %v1876_v43 }
 0xc06   : > { %v1862_v39 = vpop.f32.mrf.mxu1 }
 0xc07   : > { %2488 = vmatmul.mubr.f32.vlgmr.msra.gmra.mxu1 %v1862_v39 }
 0xc08   : > { %v2448_v40 = vpop.f32.mrf.mxu1  ;;  %2490 = vmatprep.mubr.msk.f32.mxu1 %vm2624_vm8, %v2620_v0 }
 0xc0a   : > { %v1867_v58 = vpop.f32.mrf.mxu1 }
 0xc0b   : > { %2491 = vmatmul.mubr.f32.gmra.mxu1 %v1867_v58 }
 0xc0c   : > { %v2451_v57 = vpop.f32.mrf.mxu1  ;;  %2493 = vmatprep.mubr.msk.f32.mxu1 %vm2624_vm8, %v2620_v0 }
 0xc0e   : > { %v1872_v41 = vpop.f32.mrf.mxu1 }
 0xc0f   : > { %2494 = vmatmul.mubr.f32.gmra.mxu1 %v1872_v41 }
 0xc10   : > { %v2454_v59 = vpop.f32.mrf.mxu1 }
 0xcc7   : > { %v1962_v44 = vpop.f32.mrf.mxu1 }
 0xcc8   : > { %v1963_v29 = vadd.f32 %v1962_v44, %v1895_v23 }
 0xcc9   : > { %v2489_v46 = vpop.f32.mrf.mxu1 }
 0xcca   : > { %v1976_v47 = vadd.f32 %v1963_v29, %v3440_v17 }
 0xccb   : > { %v1967_v37 = vpop.f32.mrf.mxu1 }
 0xccc   : > { %v1968_v48 = vadd.f32 %v1967_v37, %v1895_v23  ;;  %v1979_v31 = vsel %vm450_vm1, %v1976_v47, 0.0 }
 0xccd   : > { %1980 = vadd.xlane.f32.xlu1 %v1979_v31  ;;  %v2492_v49 = vpop.f32.mrf.mxu1 }
 0xcce   : > { %v1977_v50 = vadd.f32 %v1968_v48, %v3444_v21 }
 0xccf   : > { %v1972_v32 = vpop.f32.mrf.mxu1 }
 0xcd0   : > { %v1973_v51 = vadd.f32 %v1972_v32, %v1895_v23  ;;  %v1982_v53 = vsel %vm450_vm1, %v1977_v50, 0.0 }
 0xcd1   : > { %1983 = vadd.xlane.f32.xlu0 %v1982_v53  ;;  %v2495_v55 = vpop.f32.mrf.mxu1 }
 0xcd2   : > { %v1978_v45 = vadd.f32 %v1973_v51, %v3448_v33 }
 0xcd4   : > { %v1985_v22 = vsel %vm450_vm1, %v1978_v45, 0.0 }
 0xcd5   : > { %1986 = vadd.xlane.f32.xlu1 %v1985_v22 }
 0xd56   : > { %v1981_v17 = vpop.xlane.xlu1 %1980 }
 0xd57   : > { %v1988_v54 = vmul.f32 0.03125, %v1981_v17 }
 0xd59   : > { %v1991_v27 = vsub.f32 %v1976_v47, %v1988_v54 }
 0xd5a   : > { %v1984_v60 = vpop.xlane.xlu0 %1983 }
 0xd5b   : > { %v1989_v61 = vmul.f32 0.03125, %v1984_v60  ;;  %v1994_v6 = vmul.f32 %v1991_v27, %v1991_v27 }
 0xd5d   : > { %v1992_v7 = vsub.f32 %v1977_v50, %v1989_v61  ;;  %v1997_v21 = vsel %vm450_vm1, %v1994_v6, 0.0 }
 0xd5e   : > { %1998 = vadd.xlane.f32.xlu0 %v1997_v21  ;;  %v1987_v8 = vpop.xlane.xlu1 %1986 }
 0xd5f   : > { %v1990_v1 = vmul.f32 0.03125, %v1987_v8  ;;  %v1995_v3 = vmul.f32 %v1992_v7, %v1992_v7 }
 0xd61   : > { %v1993_v5 = vsub.f32 %v1978_v45, %v1990_v1  ;;  %v2000_v9 = vsel %vm450_vm1, %v1995_v3, 0.0 }
 0xd62   : > { %2001 = vadd.xlane.f32.xlu1 %v2000_v9 }
 0xd63   : > { %v1996_v33 = vmul.f32 %v1993_v5, %v1993_v5 }
 0xd65   : > { %v2003_v10 = vsel %vm450_vm1, %v1996_v33, 0.0 }
 0xd66   : > { %2004 = vadd.xlane.f32.xlu0 %v2003_v10 }
 0xde7   : > { %v1999_v2 = vpop.xlane.xlu0 %1998 }
 0xde8   : > { %v2006_v52 = vmul.f32 0.03125, %v1999_v2 }
 0xdea   : > { %v2009_v13 = vadd.f32 1e-05, %v2006_v52 }
 0xdeb   : > { %v2002_v4 = vpop.xlane.xlu1 %2001 }
 0xdec   : > { %2605 = vrsqrt.f32 %v2009_v13  ;;  %v2007_v14 = vmul.f32 0.03125, %v2002_v4 }
 0xdee   : > { %v2010_v24 = vadd.f32 1e-05, %v2007_v14 }
 0xdef   : > { %v2005_v15 = vpop.xlane.xlu0 %2004 }
 0xdf0   : > { %2607 = vrsqrt.f32 %v2010_v24  ;;  %v2008_v16 = vmul.f32 0.03125, %v2005_v15 }
 0xdf2   : > { %v2011_v18 = vadd.f32 1e-05, %v2008_v16 }
 0xdf4   : > { %2609 = vrsqrt.f32 %v2011_v18 }
 0xdf9   : > { %v2606_v20 = vpop.eup %2605 }
 0xdfa   : > { %v2015_v25 = vmul.f32 %v2606_v20, %v1991_v27 }
 0xdfc   : > { %v2022_v34 = vmul.f32 %v2021_v19, %v2015_v25 }
 0xdfd   : > { %v2608_v35 = vpop.eup %2607 }
 0xdfe   : > { %v2029_v36 = vadd.f32 %v2028_v30, %v2022_v34  ;;  %v2016_v38 = vmul.f32 %v2608_v35, %v1992_v7 }
 0xe00   : > { %2505 = vmatmul.mubr.msk.f32.vlgmr.msra.gmra.mxu0 %vm450_vm1, %v2029_v36  ;;  %v2023_v43 = vmul.f32 %v2021_v19, %v2016_v38 }
 0xe01   : > { %v2610_v39 = vpop.eup %2609  ;;  %2507 = vmatprep.mubr.msk.f32.mxu0 %vm2624_vm8, %v2620_v0 }
 0xe02   : > { %v2030_v40 = vadd.f32 %v2028_v30, %v2023_v43  ;;  %v2017_v58 = vmul.f32 %v2610_v39, %v1993_v5 }
 0xe04   : > { %2508 = vmatmul.mubr.msk.f32.gmra.mxu0 %vm450_vm1, %v2030_v40  ;;  %v2024_v28 = vmul.f32 %v2021_v19, %v2017_v58 }
 0xe05   : > { %2510 = vmatprep.mubr.msk.f32.mxu0 %vm2624_vm8, %v2620_v0 }
 0xe06   : > { %v2031_v42 = vadd.f32 %v2028_v30, %v2024_v28 }
 0xe08   : > { %2511 = vmatmul.mubr.msk.f32.gmra.mxu0 %vm450_vm1, %v2031_v42 }
 0xec0   : > { %v2118_v57 = vpop.f32.mrf.mxu0 }
 0xec1   : > { %v2119_v41 = vadd.f32 %v2211_v62, %v2118_v57 }
 0xec2   : > { %v2506_v59 = vpop.f32.mrf.mxu0 }
 0xec3   : > { %2132 = vst [vmem:[%s440_s18] sm:$0xff] %v2119_v41 }
 0xec4   : > { %v2123_v23 = vpop.f32.mrf.mxu0 }
 0xec5   : > { %v2124_v44 = vadd.f32 %v2211_v62, %v2123_v23 }
 0xec6   : > { %v2509_v29 = vpop.f32.mrf.mxu0 }
 0xec7   : > { %2133 = vst [vmem:[%s440_s18 + $0x8] sm:$0xff] %v2124_v44 }
 0xec8   : > { %v2128_v0 = vpop.f32.mrf.mxu0 }
 0xec9   : > { %v2129_v46 = vadd.f32 %v2211_v62, %v2128_v0 }
 0xeca   : > { %v2512_v47 = vpop.f32.mrf.mxu0 }
 0xecb   : > { %2134 = vst [vmem:[%s440_s18 + $0x10] sm:$0xff] %v2129_v46 }
 0xecc PF: > { %s23_s25 = sadd.s32 1, %s2618_s25  }
 0xecd   : > { %p20_p4 = scmp.ge.s32.totalorder %s23_s25, 4  }
 0xecf   :  { %22 = sbr.rel (!%p20_p4) target bundleno = 1 (0x1), region = 118 }

</bundles_post_ra>
